<compile_context>
chip_gen: v7x
topology: tpu7x:2x2x1
jax: 0.10.0
libtpu: 0.0.40
codegen_flags: <defaults>
</compile_context>

<pallas_src>
import functools

import jax
import jax.numpy as jnp
from jax import lax
from jax.experimental import pallas as pl
from jax.experimental.pallas import tpu as pltpu

NEG_INF = -9e15
LRELU_ALPHA = 0.2
BN_EPS = 1e-5


def _round_up(a, b):
    return ((a + b - 1) // b) * b


def _vmem_limit_bytes():
    # More than the default scoped VMEM (16 MiB v5e / 32 MiB v6e, v7x) but
    # safely inside physical capacity (64 MiB per TC on v7x, 128 MiB v5e/v6e).
    try:
        cap = pltpu.get_tpu_info().vmem_capacity_bytes
    except Exception:
        cap = 64 * 1024 * 1024
    return int(min(cap * 3 // 4, 100 * 1024 * 1024))


# ----------------------------------------------------------------------------
# Kernel 1: first multi-head GAT layer, one row tile of TQ query nodes/step.
# ----------------------------------------------------------------------------
def gat_layer1_kernel(x_ref, wk_ref, wc_ref, wr_ref, bias_ref, h1_ref,
                      *, nheads, nhid, tq, alpha):
    """x_ref    : (Np, Fin)       bf16  node features (resident; all key nodes)
       wk_ref   : (Fin, H*nhid)   bf16  per-head W packed side by side
       wc_ref   : (Fin, H)        bf16  packed W_h @ a1_h  (target/col scores)
       wr_ref   : (H, Fin)        bf16  packed W_h @ a2_h  (source/row scores)
       bias_ref : (TQ, Np)        bf16  additive mask bias tile (0 / -9e15)
       h1_ref   : (TQ, H*nhid)    bf16  output tile (single lane-dense store)
    """
    i = pl.program_id(0)

    x = x_ref[...]                                              # (Np, Fin)
    # Key-side projections for ALL nodes.  Recomputed per row tile: the MXU
    # cost is a few percent of the VPU/EUP-bound softmax work and keeping the
    # tile axis free of cross-step state lets it run "parallel" on megacore.
    wh_all = jnp.dot(x, wk_ref[...],
                     preferred_element_type=jnp.float32)        # (Np, H*nhid)
    wh_all = wh_all.astype(jnp.bfloat16)
    row_all = lax.dot_general(wr_ref[...], x, (((1,), (1,)), ((), ())),
                              preferred_element_type=jnp.float32)  # (H, Np)

    # Query-side column scores for this tile only.
    qstart = pl.multiple_of(i * tq, tq)
    x_q = x_ref[pl.ds(qstart, tq), :]                           # (TQ, Fin)
    col_q = jnp.dot(x_q, wc_ref[...],
                    preferred_element_type=jnp.float32)         # (TQ, H)

    bias = bias_ref[...].astype(jnp.float32)                    # once per tile

    heads = []
    for h in range(nheads):                                     # static unroll
        e = col_q[:, h:h + 1] + row_all[h:h + 1, :]             # (TQ, Np)
        e = jnp.maximum(e, alpha * e)                           # LeakyReLU
        e = e + bias                                            # mask after LReLU
        m = jnp.max(e, axis=1, keepdims=True)
        p = jnp.exp(e - m)
        inv = pl.reciprocal(jnp.sum(p, axis=1, keepdims=True), approx=True)
        p = (p * inv).astype(jnp.bfloat16)
        hp = jnp.dot(p, wh_all[:, h * nhid:(h + 1) * nhid],
                     preferred_element_type=jnp.float32)        # (TQ, nhid)
        # ELU (concat=True); negative branch only sees exp(<=0): no overflow.
        heads.append(jnp.where(hp > 0, hp, jnp.exp(jnp.minimum(hp, 0.0)) - 1.0))

    # Collect all heads and store once at full lane width (H*nhid).
    h1_ref[...] = jnp.concatenate(heads, axis=1).astype(h1_ref.dtype)


# ----------------------------------------------------------------------------
# Kernel 2: second GAT layer + folded BN + mean pool + MLP head.
# Row tiles are a reduction axis here (pooled-mean accumulator), so the grid
# is "arbitrary"; the MLP head runs once, on the last tile.
# ----------------------------------------------------------------------------
def gat_layer2_head_kernel(h1_ref, w2_ref, w2c_ref, w2r_ref, bias_ref,
                           head_a_ref, head_b_ref, out_ref, acc_ref,
                           *, nhid, tq, n_real, alpha):
    i = pl.program_id(0)

    @pl.when(i == 0)
    def _init():
        acc_ref[...] = jnp.zeros_like(acc_ref)

    h1 = h1_ref[...]                                            # (Np, HF) bf16
    wh2 = jnp.dot(h1, w2_ref[...],
                  preferred_element_type=jnp.float32)           # (Np, nhid)
    row2 = lax.dot_general(w2r_ref[...], h1, (((1,), (1,)), ((), ())),
                           preferred_element_type=jnp.float32)  # (1, Np)

    qstart = pl.multiple_of(i * tq, tq)
    h1_q = h1_ref[pl.ds(qstart, tq), :]                         # (TQ, HF)
    col2 = jnp.dot(h1_q, w2c_ref[...],
                   preferred_element_type=jnp.float32)          # (TQ, 1)

    e = col2 + row2                                             # (TQ, Np)
    e = jnp.maximum(e, alpha * e)                               # LeakyReLU
    e = e + bias_ref[...].astype(jnp.float32)
    m = jnp.max(e, axis=1, keepdims=True)
    p = jnp.exp(e - m)
    inv = pl.reciprocal(jnp.sum(p, axis=1, keepdims=True), approx=True)
    p = (p * inv).astype(jnp.bfloat16)
    h2 = jnp.dot(p, wh2.astype(jnp.bfloat16),
                 preferred_element_type=jnp.float32)            # (TQ, nhid)
    h2 = jnp.where(h2 > 0, h2, jnp.exp(jnp.minimum(h2, 0.0)) - 1.0)   # ELU

    # Exclude padded query rows from the graph mean.
    ridx = qstart + lax.broadcasted_iota(jnp.int32, (tq, 1), 0)
    h2 = jnp.where(ridx < n_real, h2, 0.0)
    acc_ref[...] += jnp.sum(h2, axis=0, keepdims=True)

    @pl.when(i == pl.num_programs(0) - 1)
    def _finalize():
        pooled = acc_ref[...] * (1.0 / n_real)                  # (1, nhid)
        ha = head_a_ref[...]                                    # (nhid+1, nh2)
        hb = head_b_ref[...]                                    # (nh2+1, 1)
        y = jnp.dot(pooled, ha[:nhid, :],
                    preferred_element_type=jnp.float32) + ha[nhid:, :]
        y = jnp.maximum(y, 0.0)                                 # ReLU (BN folded)
        nh2 = hb.shape[0] - 1
        z = jnp.dot(y, hb[:nh2, :],
                    preferred_element_type=jnp.float32) + hb[nh2:, :]
        out_ref[...] = 1.0 / (1.0 + jnp.exp(-z))                # sigmoid


# ----------------------------------------------------------------------------
# Wrapper: weight packing (tiny, done once in XLA) + the two pallas_calls.
# ----------------------------------------------------------------------------
def hdl_graph_attention_forward(x, edge_index, edge_attr, params, *, tile_q=None):
    N, fin = x.shape
    nheads, _, nhid = params["W1"].shape
    hf = nheads * nhid
    nh2 = params["fc1_w"].shape[1]

    # Row-tile size (multiple of 8); pad node count to a whole number of tiles.
    if tile_q is None:
        tile_q = 256
    tq = min(_round_up(tile_q, 8), _round_up(N, 8))
    np_ = _round_up(N, tq)
    num_tiles = np_ // tq

    # Dense adjacency -> additive attention bias: 0 on edges, NEG_INF elsewhere
    # (edge weights only matter through adj > 0, exactly as in the reference).
    # Stored in bf16; padded rows/cols are fully masked.
    adj = jnp.zeros((N, N), jnp.float32).at[edge_index[0], edge_index[1]].set(edge_attr)
    bias = jnp.where(adj > 0.0, 0.0, NEG_INF)
    bias = jnp.full((np_, np_), NEG_INF, jnp.float32).at[:N, :N].set(bias)
    bias = bias.astype(jnp.bfloat16)

    x_p = jnp.zeros((np_, fin), jnp.float32).at[:N, :].set(x).astype(jnp.bfloat16)

    # ---- pack layer-1 weights: all heads fused, a1/a2 folded into W ----
    w1 = params["W1"]                                               # (H, Fin, nhid)
    w1_k = jnp.transpose(w1, (1, 0, 2)).reshape(fin, hf).astype(jnp.bfloat16)
    w1_c = jnp.einsum("hfo,ho->fh", w1, params["a1_1"][:, :, 0]).astype(jnp.bfloat16)
    w1_r = jnp.einsum("hfo,ho->hf", w1, params["a1_2"][:, 0, :]).astype(jnp.bfloat16)

    # ---- pack layer-2 weights ----
    w2 = params["W2"]
    w2_b = w2.astype(jnp.bfloat16)                                  # (HF, nhid)
    w2_c = (w2 @ params["a2_1"]).astype(jnp.bfloat16)               # (HF, 1)
    w2_r = (w2 @ params["a2_2"][0])[None, :].astype(jnp.bfloat16)   # (1, HF)

    # ---- fold eval-mode BatchNorms into the MLP head (exact, affine) ----
    s1 = params["bn1_g"] / jnp.sqrt(params["bn1_v"] + BN_EPS)
    t1 = params["bn1_b"] - params["bn1_m"] * s1
    s2 = params["bn2_g"] / jnp.sqrt(params["bn2_v"] + BN_EPS)
    t2 = params["bn2_b"] - params["bn2_m"] * s2
    fc1w = s1.reshape(nhid, 1) * params["fc1_w"]
    fc1b = t1 @ params["fc1_w"] + params["fc1_b"]
    fc2w = s2.reshape(nh2, 1) * params["fc2_w"]
    fc2b = t2 @ params["fc2_w"] + params["fc2_b"]
    head_a = jnp.concatenate([fc1w, fc1b], axis=0).astype(jnp.float32)  # (nhid+1, nh2)
    head_b = jnp.concatenate([fc2w, fc2b], axis=0).astype(jnp.float32)  # (nh2+1, 1)

    vmem_limit = _vmem_limit_bytes()

    # ---- layer 1: multi-head GAT, row-tiled, megacore-parallel ----
    h1 = pl.pallas_call(
        functools.partial(gat_layer1_kernel, nheads=nheads, nhid=nhid, tq=tq,
                          alpha=LRELU_ALPHA),
        grid=(num_tiles,),
        out_shape=jax.ShapeDtypeStruct((np_, hf), jnp.bfloat16),
        in_specs=[
            pl.BlockSpec((np_, fin), lambda i: (0, 0)),      # x (resident)
            pl.BlockSpec((fin, hf), lambda i: (0, 0)),       # W (all heads)
            pl.BlockSpec((fin, nheads), lambda i: (0, 0)),   # W @ a1 (col scores)
            pl.BlockSpec((nheads, fin), lambda i: (0, 0)),   # W @ a2 (row scores)
            pl.BlockSpec((tq, np_), lambda i: (i, 0)),       # bias tile (streamed)
        ],
        out_specs=pl.BlockSpec((tq, hf), lambda i: (i, 0)),
        compiler_params=pltpu.CompilerParams(
            dimension_semantics=("parallel",),
            vmem_limit_bytes=vmem_limit),
    )(x_p, w1_k, w1_c, w1_r, bias)

    # ---- layer 2 + folded BN + mean pool + MLP head (row-tile reduction) ----
    out = pl.pallas_call(
        functools.partial(gat_layer2_head_kernel, nhid=nhid, tq=tq, n_real=N,
                          alpha=LRELU_ALPHA),
        grid=(num_tiles,),
        out_shape=jax.ShapeDtypeStruct((1, 1), jnp.float32),
        in_specs=[
            pl.BlockSpec((np_, hf), lambda i: (0, 0)),       # h1 (resident)
            pl.BlockSpec((hf, nhid), lambda i: (0, 0)),      # W2
            pl.BlockSpec((hf, 1), lambda i: (0, 0)),         # W2 @ a2_1
            pl.BlockSpec((1, hf), lambda i: (0, 0)),         # (W2 @ a2_2)^T
            pl.BlockSpec((tq, np_), lambda i: (i, 0)),       # bias tile (streamed)
            pl.BlockSpec((nhid + 1, nh2), lambda i: (0, 0)), # folded fc1 slab
            pl.BlockSpec((nh2 + 1, 1), lambda i: (0, 0)),    # folded fc2 slab
        ],
        out_specs=pl.BlockSpec((1, 1), lambda i: (0, 0)),
        scratch_shapes=[pltpu.VMEM((1, nhid), jnp.float32)],
        compiler_params=pltpu.CompilerParams(
            dimension_semantics=("arbitrary",),
            vmem_limit_bytes=vmem_limit),
    )(h1, w2_b, w2_c, w2_r, bias, head_a, head_b)
    return out


# ----------------------------------------------------------------------------
# Pure-JAX f32 reference (mirrors the PyTorch math) for a correctness check.
# ----------------------------------------------------------------------------
def _gat_ref(h, adj, W, a1, a2, alpha=LRELU_ALPHA, concat=True):
    Wh = h @ W
    e = Wh @ a1 + (Wh @ a2.reshape(-1, 1)).T
    e = jnp.where(e > 0, e, alpha * e)
    e = jnp.where(adj > 0, e, NEG_INF)
    att = jax.nn.softmax(e, axis=1)
    hp = att @ Wh
    if concat:
        hp = jnp.where(hp > 0, hp, jnp.exp(hp) - 1.0)
    return hp


def _forward_ref(x, edge_index, edge_attr, p):
    N = x.shape[0]
    adj = jnp.zeros((N, N), jnp.float32).at[edge_index[0], edge_index[1]].set(edge_attr)
    heads = [_gat_ref(x, adj, p["W1"][i], p["a1_1"][i], p["a1_2"][i])
             for i in range(p["W1"].shape[0])]
    h = jnp.concatenate(heads, axis=1)
    h2 = _gat_ref(h, adj, p["W2"], p["a2_1"], p["a2_2"])
    h2 = (h2 - p["bn1_m"]) / jnp.sqrt(p["bn1_v"] + BN_EPS) * p["bn1_g"] + p["bn1_b"]
    pooled = jnp.mean(h2, axis=0, keepdims=True)
    y = jnp.maximum(pooled @ p["fc1_w"] + p["fc1_b"], 0.0)
    y = (y - p["bn2_m"]) / jnp.sqrt(p["bn2_v"] + BN_EPS) * p["bn2_g"] + p["bn2_b"]
    z = y @ p["fc2_w"] + p["fc2_b"]
    return jax.nn.sigmoid(z)


if __name__ == "__main__":
    # Small, module-consistent shapes: nfeat=64 (stand-in for the 768-dim
    # GraphCodeBERT embeddings), nhid=16, nheads=8 (module default).
    N, nfeat, nhid, nheads = 80, 64, 16, 8
    key = jax.random.PRNGKey(0)
    ks = jax.random.split(key, 20)

    x = jax.random.normal(ks[0], (N, nfeat), jnp.float32)

    # Deterministic graph: ring (both directions) + self loops, positive weights.
    idx = jnp.arange(N)
    src = jnp.concatenate([idx, idx, idx])
    dst = jnp.concatenate([(idx + 1) % N, (idx - 1) % N, idx])
    edge_index = jnp.stack([src, dst]).astype(jnp.int32)           # (2, 3N)
    edge_attr = jax.random.uniform(ks[1], (edge_index.shape[1],),
                                   minval=0.5, maxval=1.5, dtype=jnp.float32)

    params = {
        # first multi-head GAT layer
        "W1":   0.2 * jax.random.normal(ks[2], (nheads, nfeat, nhid), jnp.float32),
        "a1_1": 0.2 * jax.random.normal(ks[3], (nheads, nhid, 1), jnp.float32),
        "a1_2": 0.2 * jax.random.normal(ks[4], (nheads, 1, nhid), jnp.float32),
        # second GAT layer
        "W2":   0.2 * jax.random.normal(ks[5], (nheads * nhid, nhid), jnp.float32),
        "a2_1": 0.2 * jax.random.normal(ks[6], (nhid, 1), jnp.float32),
        "a2_2": 0.2 * jax.random.normal(ks[7], (1, nhid), jnp.float32),
        # bn1 (eval-mode running stats)
        "bn1_g": 1.0 + 0.1 * jax.random.normal(ks[8], (1, nhid), jnp.float32),
        "bn1_b": 0.1 * jax.random.normal(ks[9], (1, nhid), jnp.float32),
        "bn1_m": 0.1 * jax.random.normal(ks[10], (1, nhid), jnp.float32),
        "bn1_v": jax.random.uniform(ks[11], (1, nhid), minval=0.5, maxval=1.5,
                                    dtype=jnp.float32),
        # fc1: nhid -> nhid//2  (stored as (in, out))
        "fc1_w": 0.2 * jax.random.normal(ks[12], (nhid, nhid // 2), jnp.float32),
        "fc1_b": 0.1 * jax.random.normal(ks[13], (1, nhid // 2), jnp.float32),
        # bn2
        "bn2_g": 1.0 + 0.1 * jax.random.normal(ks[14], (1, nhid // 2), jnp.float32),
        "bn2_b": 0.1 * jax.random.normal(ks[15], (1, nhid // 2), jnp.float32),
        "bn2_m": 0.1 * jax.random.normal(ks[16], (1, nhid // 2), jnp.float32),
        "bn2_v": jax.random.uniform(ks[17], (1, nhid // 2), minval=0.5, maxval=1.5,
                                    dtype=jnp.float32),
        # fc2: nhid//2 -> 1
        "fc2_w": 0.2 * jax.random.normal(ks[18], (nhid // 2, 1), jnp.float32),
        "fc2_b": 0.1 * jax.random.normal(ks[19], (1, 1), jnp.float32),
    }

    # tile_q=32 exercises the multi-tile row grid and the N -> Np padding path.
    out = hdl_graph_attention_forward(x, edge_index, edge_attr, params, tile_q=32)
    out = jax.block_until_ready(out)

    ref = _forward_ref(x, edge_index, edge_attr, params)
    assert out.shape == (1, 1)
    # Tolerance accounts for bf16 MXU operands and the EUP approximate
    # reciprocal in the softmax normalization (reference is pure f32).
    assert jnp.allclose(out, ref, rtol=3e-2, atol=2e-2), (out, ref)

    print("KERNEL_OK")
</pallas_src>

<mosaic_0001>
module attributes {stable_mosaic.version = 11 : i64} {
  func.func @gat_layer1_kernel(%arg0: i32, %arg1: memref<96x64xbf16, #tpu.memory_space<vmem>>, %arg2: memref<64x128xbf16, #tpu.memory_space<vmem>>, %arg3: memref<64x8xbf16, #tpu.memory_space<vmem>>, %arg4: memref<8x64xbf16, #tpu.memory_space<vmem>>, %arg5: memref<32x96xbf16, #tpu.memory_space<vmem>>, %arg6: memref<32x128xbf16, #tpu.memory_space<vmem>>) attributes {dimension_semantics = [#tpu.dimension_semantics<parallel>], iteration_bounds = array<i64: 3>, scalar_prefetch = 0 : i64, scratch_operands = 0 : i64, tpu.core_type = #tpu.core_type<tc>, window_params = [{pipeline_mode = #tpu.pipeline_mode<synchronous>, transform_indices = @transform_0, window_bounds = array<i64: 96, 64>}, {pipeline_mode = #tpu.pipeline_mode<synchronous>, transform_indices = @transform_1, window_bounds = array<i64: 64, 128>}, {pipeline_mode = #tpu.pipeline_mode<synchronous>, transform_indices = @transform_2, window_bounds = array<i64: 64, 8>}, {pipeline_mode = #tpu.pipeline_mode<synchronous>, transform_indices = @transform_3, window_bounds = array<i64: 8, 64>}, {transform_indices = @transform_4, window_bounds = array<i64: 32, 96>}, {transform_indices = @transform_5, window_bounds = array<i64: 32, 128>}]} {
    %c0 = arith.constant 0 : index
    %c0_0 = arith.constant 0 : index
    %0 = vector.load %arg1[%c0, %c0_0] : memref<96x64xbf16, #tpu.memory_space<vmem>>, vector<96x64xbf16>
    %c0_1 = arith.constant 0 : index
    %c0_2 = arith.constant 0 : index
    %1 = vector.load %arg2[%c0_1, %c0_2] : memref<64x128xbf16, #tpu.memory_space<vmem>>, vector<64x128xbf16>
    %cst = arith.constant dense<0.000000e+00> : vector<96x128xf32>
    %2 = tpu.matmul %0, %1, %cst {dimension_numbers = #tpu.dot_dimension_numbers<[1], [0], [0], [1], [0, 0, 1, 1], [], []>} : vector<96x64xbf16>, vector<64x128xbf16>, vector<96x128xf32> -> vector<96x128xf32>
    %3 = arith.truncf %2 : vector<96x128xf32> to vector<96x128xbf16>
    %c0_3 = arith.constant 0 : index
    %c0_4 = arith.constant 0 : index
    %4 = vector.load %arg4[%c0_3, %c0_4] : memref<8x64xbf16, #tpu.memory_space<vmem>>, vector<8x64xbf16>
    %cst_5 = arith.constant dense<0.000000e+00> : vector<8x96xf32>
    %5 = tpu.matmul %4, %0, %cst_5 {dimension_numbers = #tpu.dot_dimension_numbers<[1], [1], [0], [0], [0, 0, 1, 0], [], []>} : vector<8x64xbf16>, vector<96x64xbf16>, vector<8x96xf32> -> vector<8x96xf32>
    %c32_i32 = arith.constant 32 : i32
    %6 = arith.muli %arg0, %c32_i32 : i32
    %7 = tpu.assume_multiple %6, 32 : i32
    %8 = arith.index_cast %7 : i32 to index
    %c0_6 = arith.constant 0 : index
    %9 = vector.load %arg1[%8, %c0_6] : memref<96x64xbf16, #tpu.memory_space<vmem>>, vector<32x64xbf16>
    %c0_7 = arith.constant 0 : index
    %c0_8 = arith.constant 0 : index
    %10 = vector.load %arg3[%c0_7, %c0_8] : memref<64x8xbf16, #tpu.memory_space<vmem>>, vector<64x8xbf16>
    %cst_9 = arith.constant dense<0.000000e+00> : vector<32x8xf32>
    %11 = tpu.matmul %9, %10, %cst_9 {dimension_numbers = #tpu.dot_dimension_numbers<[1], [0], [0], [1], [0, 0, 1, 1], [], []>} : vector<32x64xbf16>, vector<64x8xbf16>, vector<32x8xf32> -> vector<32x8xf32>
    %c0_10 = arith.constant 0 : index
    %c0_11 = arith.constant 0 : index
    %12 = vector.load %arg5[%c0_10, %c0_11] : memref<32x96xbf16, #tpu.memory_space<vmem>>, vector<32x96xbf16>
    %13 = arith.extf %12 : vector<32x96xbf16> to vector<32x96xf32>
    %14 = vector.extract_strided_slice %11 {offsets = [0, 0], sizes = [32, 1], strides = [1, 1]} : vector<32x8xf32> to vector<32x1xf32>
    %15 = vector.extract_strided_slice %5 {offsets = [0, 0], sizes = [1, 96], strides = [1, 1]} : vector<8x96xf32> to vector<1x96xf32>
    %16 = vector.broadcast %14 : vector<32x1xf32> to vector<32x96xf32>
    %17 = vector.broadcast %15 : vector<1x96xf32> to vector<32x96xf32>
    %18 = arith.addf %16, %17 : vector<32x96xf32>
    %cst_12 = arith.constant 2.000000e-01 : f32
    %19 = vector.broadcast %cst_12 : f32 to vector<32x96xf32>
    %20 = arith.mulf %19, %18 : vector<32x96xf32>
    %21 = arith.maximumf %18, %20 : vector<32x96xf32>
    %22 = arith.addf %21, %13 : vector<32x96xf32>
    %cst_13 = arith.constant dense<0xFF800000> : vector<32xf32>
    %23 = vector.multi_reduction <maximumf>, %22, %cst_13 [1] : vector<32x96xf32> to vector<32xf32>
    %24 = vector.shape_cast %23 : vector<32xf32> to vector<32x1xf32>
    %25 = vector.broadcast %24 : vector<32x1xf32> to vector<32x96xf32>
    %26 = arith.subf %22, %25 : vector<32x96xf32>
    %27 = math.exp %26 : vector<32x96xf32>
    %cst_14 = arith.constant dense<0.000000e+00> : vector<32xf32>
    %28 = vector.multi_reduction <add>, %27, %cst_14 [1] : vector<32x96xf32> to vector<32xf32>
    %29 = vector.shape_cast %28 : vector<32xf32> to vector<32x1xf32>
    %30 = tpu.reciprocal %29 {approx = true} : vector<32x1xf32> -> vector<32x1xf32>
    %31 = vector.broadcast %30 : vector<32x1xf32> to vector<32x96xf32>
    %32 = arith.mulf %27, %31 : vector<32x96xf32>
    %33 = arith.truncf %32 : vector<32x96xf32> to vector<32x96xbf16>
    %34 = vector.extract_strided_slice %3 {offsets = [0, 0], sizes = [96, 16], strides = [1, 1]} : vector<96x128xbf16> to vector<96x16xbf16>
    %cst_15 = arith.constant dense<0.000000e+00> : vector<32x16xf32>
    %35 = tpu.matmul %33, %34, %cst_15 {dimension_numbers = #tpu.dot_dimension_numbers<[1], [0], [0], [1], [0, 0, 1, 1], [], []>} : vector<32x96xbf16>, vector<96x16xbf16>, vector<32x16xf32> -> vector<32x16xf32>
    %cst_16 = arith.constant 0.000000e+00 : f32
    %36 = vector.broadcast %cst_16 : f32 to vector<32x16xf32>
    %37 = arith.cmpf ogt, %35, %36 : vector<32x16xf32>
    %cst_17 = arith.constant 0.000000e+00 : f32
    %38 = vector.broadcast %cst_17 : f32 to vector<32x16xf32>
    %39 = arith.minimumf %35, %38 : vector<32x16xf32>
    %40 = math.exp %39 : vector<32x16xf32>
    %cst_18 = arith.constant 1.000000e+00 : f32
    %41 = vector.broadcast %cst_18 : f32 to vector<32x16xf32>
    %42 = arith.subf %40, %41 : vector<32x16xf32>
    %43 = arith.select %37, %35, %42 : vector<32x16xi1>, vector<32x16xf32>
    %44 = vector.extract_strided_slice %11 {offsets = [0, 1], sizes = [32, 1], strides = [1, 1]} : vector<32x8xf32> to vector<32x1xf32>
    %45 = vector.extract_strided_slice %5 {offsets = [1, 0], sizes = [1, 96], strides = [1, 1]} : vector<8x96xf32> to vector<1x96xf32>
    %46 = vector.broadcast %44 : vector<32x1xf32> to vector<32x96xf32>
    %47 = vector.broadcast %45 : vector<1x96xf32> to vector<32x96xf32>
    %48 = arith.addf %46, %47 : vector<32x96xf32>
    %cst_19 = arith.constant 2.000000e-01 : f32
    %49 = vector.broadcast %cst_19 : f32 to vector<32x96xf32>
    %50 = arith.mulf %49, %48 : vector<32x96xf32>
    %51 = arith.maximumf %48, %50 : vector<32x96xf32>
    %52 = arith.addf %51, %13 : vector<32x96xf32>
    %cst_20 = arith.constant dense<0xFF800000> : vector<32xf32>
    %53 = vector.multi_reduction <maximumf>, %52, %cst_20 [1] : vector<32x96xf32> to vector<32xf32>
    %54 = vector.shape_cast %53 : vector<32xf32> to vector<32x1xf32>
    %55 = vector.broadcast %54 : vector<32x1xf32> to vector<32x96xf32>
    %56 = arith.subf %52, %55 : vector<32x96xf32>
    %57 = math.exp %56 : vector<32x96xf32>
    %cst_21 = arith.constant dense<0.000000e+00> : vector<32xf32>
    %58 = vector.multi_reduction <add>, %57, %cst_21 [1] : vector<32x96xf32> to vector<32xf32>
    %59 = vector.shape_cast %58 : vector<32xf32> to vector<32x1xf32>
    %60 = tpu.reciprocal %59 {approx = true} : vector<32x1xf32> -> vector<32x1xf32>
    %61 = vector.broadcast %60 : vector<32x1xf32> to vector<32x96xf32>
    %62 = arith.mulf %57, %61 : vector<32x96xf32>
    %63 = arith.truncf %62 : vector<32x96xf32> to vector<32x96xbf16>
    %64 = vector.extract_strided_slice %3 {offsets = [0, 16], sizes = [96, 16], strides = [1, 1]} : vector<96x128xbf16> to vector<96x16xbf16>
    %cst_22 = arith.constant dense<0.000000e+00> : vector<32x16xf32>
    %65 = tpu.matmul %63, %64, %cst_22 {dimension_numbers = #tpu.dot_dimension_numbers<[1], [0], [0], [1], [0, 0, 1, 1], [], []>} : vector<32x96xbf16>, vector<96x16xbf16>, vector<32x16xf32> -> vector<32x16xf32>
    %cst_23 = arith.constant 0.000000e+00 : f32
    %66 = vector.broadcast %cst_23 : f32 to vector<32x16xf32>
    %67 = arith.cmpf ogt, %65, %66 : vector<32x16xf32>
    %cst_24 = arith.constant 0.000000e+00 : f32
    %68 = vector.broadcast %cst_24 : f32 to vector<32x16xf32>
    %69 = arith.minimumf %65, %68 : vector<32x16xf32>
    %70 = math.exp %69 : vector<32x16xf32>
    %cst_25 = arith.constant 1.000000e+00 : f32
    %71 = vector.broadcast %cst_25 : f32 to vector<32x16xf32>
    %72 = arith.subf %70, %71 : vector<32x16xf32>
    %73 = arith.select %67, %65, %72 : vector<32x16xi1>, vector<32x16xf32>
    %74 = vector.extract_strided_slice %11 {offsets = [0, 2], sizes = [32, 1], strides = [1, 1]} : vector<32x8xf32> to vector<32x1xf32>
    %75 = vector.extract_strided_slice %5 {offsets = [2, 0], sizes = [1, 96], strides = [1, 1]} : vector<8x96xf32> to vector<1x96xf32>
    %76 = vector.broadcast %74 : vector<32x1xf32> to vector<32x96xf32>
    %77 = vector.broadcast %75 : vector<1x96xf32> to vector<32x96xf32>
    %78 = arith.addf %76, %77 : vector<32x96xf32>
    %cst_26 = arith.constant 2.000000e-01 : f32
    %79 = vector.broadcast %cst_26 : f32 to vector<32x96xf32>
    %80 = arith.mulf %79, %78 : vector<32x96xf32>
    %81 = arith.maximumf %78, %80 : vector<32x96xf32>
    %82 = arith.addf %81, %13 : vector<32x96xf32>
    %cst_27 = arith.constant dense<0xFF800000> : vector<32xf32>
    %83 = vector.multi_reduction <maximumf>, %82, %cst_27 [1] : vector<32x96xf32> to vector<32xf32>
    %84 = vector.shape_cast %83 : vector<32xf32> to vector<32x1xf32>
    %85 = vector.broadcast %84 : vector<32x1xf32> to vector<32x96xf32>
    %86 = arith.subf %82, %85 : vector<32x96xf32>
    %87 = math.exp %86 : vector<32x96xf32>
    %cst_28 = arith.constant dense<0.000000e+00> : vector<32xf32>
    %88 = vector.multi_reduction <add>, %87, %cst_28 [1] : vector<32x96xf32> to vector<32xf32>
    %89 = vector.shape_cast %88 : vector<32xf32> to vector<32x1xf32>
    %90 = tpu.reciprocal %89 {approx = true} : vector<32x1xf32> -> vector<32x1xf32>
    %91 = vector.broadcast %90 : vector<32x1xf32> to vector<32x96xf32>
    %92 = arith.mulf %87, %91 : vector<32x96xf32>
    %93 = arith.truncf %92 : vector<32x96xf32> to vector<32x96xbf16>
    %94 = vector.extract_strided_slice %3 {offsets = [0, 32], sizes = [96, 16], strides = [1, 1]} : vector<96x128xbf16> to vector<96x16xbf16>
    %cst_29 = arith.constant dense<0.000000e+00> : vector<32x16xf32>
    %95 = tpu.matmul %93, %94, %cst_29 {dimension_numbers = #tpu.dot_dimension_numbers<[1], [0], [0], [1], [0, 0, 1, 1], [], []>} : vector<32x96xbf16>, vector<96x16xbf16>, vector<32x16xf32> -> vector<32x16xf32>
    %cst_30 = arith.constant 0.000000e+00 : f32
    %96 = vector.broadcast %cst_30 : f32 to vector<32x16xf32>
    %97 = arith.cmpf ogt, %95, %96 : vector<32x16xf32>
    %cst_31 = arith.constant 0.000000e+00 : f32
    %98 = vector.broadcast %cst_31 : f32 to vector<32x16xf32>
    %99 = arith.minimumf %95, %98 : vector<32x16xf32>
    %100 = math.exp %99 : vector<32x16xf32>
    %cst_32 = arith.constant 1.000000e+00 : f32
    %101 = vector.broadcast %cst_32 : f32 to vector<32x16xf32>
    %102 = arith.subf %100, %101 : vector<32x16xf32>
    %103 = arith.select %97, %95, %102 : vector<32x16xi1>, vector<32x16xf32>
    %104 = vector.extract_strided_slice %11 {offsets = [0, 3], sizes = [32, 1], strides = [1, 1]} : vector<32x8xf32> to vector<32x1xf32>
    %105 = vector.extract_strided_slice %5 {offsets = [3, 0], sizes = [1, 96], strides = [1, 1]} : vector<8x96xf32> to vector<1x96xf32>
    %106 = vector.broadcast %104 : vector<32x1xf32> to vector<32x96xf32>
    %107 = vector.broadcast %105 : vector<1x96xf32> to vector<32x96xf32>
    %108 = arith.addf %106, %107 : vector<32x96xf32>
    %cst_33 = arith.constant 2.000000e-01 : f32
    %109 = vector.broadcast %cst_33 : f32 to vector<32x96xf32>
    %110 = arith.mulf %109, %108 : vector<32x96xf32>
    %111 = arith.maximumf %108, %110 : vector<32x96xf32>
    %112 = arith.addf %111, %13 : vector<32x96xf32>
    %cst_34 = arith.constant dense<0xFF800000> : vector<32xf32>
    %113 = vector.multi_reduction <maximumf>, %112, %cst_34 [1] : vector<32x96xf32> to vector<32xf32>
    %114 = vector.shape_cast %113 : vector<32xf32> to vector<32x1xf32>
    %115 = vector.broadcast %114 : vector<32x1xf32> to vector<32x96xf32>
    %116 = arith.subf %112, %115 : vector<32x96xf32>
    %117 = math.exp %116 : vector<32x96xf32>
    %cst_35 = arith.constant dense<0.000000e+00> : vector<32xf32>
    %118 = vector.multi_reduction <add>, %117, %cst_35 [1] : vector<32x96xf32> to vector<32xf32>
    %119 = vector.shape_cast %118 : vector<32xf32> to vector<32x1xf32>
    %120 = tpu.reciprocal %119 {approx = true} : vector<32x1xf32> -> vector<32x1xf32>
    %121 = vector.broadcast %120 : vector<32x1xf32> to vector<32x96xf32>
    %122 = arith.mulf %117, %121 : vector<32x96xf32>
    %123 = arith.truncf %122 : vector<32x96xf32> to vector<32x96xbf16>
    %124 = vector.extract_strided_slice %3 {offsets = [0, 48], sizes = [96, 16], strides = [1, 1]} : vector<96x128xbf16> to vector<96x16xbf16>
    %cst_36 = arith.constant dense<0.000000e+00> : vector<32x16xf32>
    %125 = tpu.matmul %123, %124, %cst_36 {dimension_numbers = #tpu.dot_dimension_numbers<[1], [0], [0], [1], [0, 0, 1, 1], [], []>} : vector<32x96xbf16>, vector<96x16xbf16>, vector<32x16xf32> -> vector<32x16xf32>
    %cst_37 = arith.constant 0.000000e+00 : f32
    %126 = vector.broadcast %cst_37 : f32 to vector<32x16xf32>
    %127 = arith.cmpf ogt, %125, %126 : vector<32x16xf32>
    %cst_38 = arith.constant 0.000000e+00 : f32
    %128 = vector.broadcast %cst_38 : f32 to vector<32x16xf32>
    %129 = arith.minimumf %125, %128 : vector<32x16xf32>
    %130 = math.exp %129 : vector<32x16xf32>
    %cst_39 = arith.constant 1.000000e+00 : f32
    %131 = vector.broadcast %cst_39 : f32 to vector<32x16xf32>
    %132 = arith.subf %130, %131 : vector<32x16xf32>
    %133 = arith.select %127, %125, %132 : vector<32x16xi1>, vector<32x16xf32>
    %134 = vector.extract_strided_slice %11 {offsets = [0, 4], sizes = [32, 1], strides = [1, 1]} : vector<32x8xf32> to vector<32x1xf32>
    %135 = vector.extract_strided_slice %5 {offsets = [4, 0], sizes = [1, 96], strides = [1, 1]} : vector<8x96xf32> to vector<1x96xf32>
    %136 = vector.broadcast %134 : vector<32x1xf32> to vector<32x96xf32>
    %137 = vector.broadcast %135 : vector<1x96xf32> to vector<32x96xf32>
    %138 = arith.addf %136, %137 : vector<32x96xf32>
    %cst_40 = arith.constant 2.000000e-01 : f32
    %139 = vector.broadcast %cst_40 : f32 to vector<32x96xf32>
    %140 = arith.mulf %139, %138 : vector<32x96xf32>
    %141 = arith.maximumf %138, %140 : vector<32x96xf32>
    %142 = arith.addf %141, %13 : vector<32x96xf32>
    %cst_41 = arith.constant dense<0xFF800000> : vector<32xf32>
    %143 = vector.multi_reduction <maximumf>, %142, %cst_41 [1] : vector<32x96xf32> to vector<32xf32>
    %144 = vector.shape_cast %143 : vector<32xf32> to vector<32x1xf32>
    %145 = vector.broadcast %144 : vector<32x1xf32> to vector<32x96xf32>
    %146 = arith.subf %142, %145 : vector<32x96xf32>
    %147 = math.exp %146 : vector<32x96xf32>
    %cst_42 = arith.constant dense<0.000000e+00> : vector<32xf32>
    %148 = vector.multi_reduction <add>, %147, %cst_42 [1] : vector<32x96xf32> to vector<32xf32>
    %149 = vector.shape_cast %148 : vector<32xf32> to vector<32x1xf32>
    %150 = tpu.reciprocal %149 {approx = true} : vector<32x1xf32> -> vector<32x1xf32>
    %151 = vector.broadcast %150 : vector<32x1xf32> to vector<32x96xf32>
    %152 = arith.mulf %147, %151 : vector<32x96xf32>
    %153 = arith.truncf %152 : vector<32x96xf32> to vector<32x96xbf16>
    %154 = vector.extract_strided_slice %3 {offsets = [0, 64], sizes = [96, 16], strides = [1, 1]} : vector<96x128xbf16> to vector<96x16xbf16>
    %cst_43 = arith.constant dense<0.000000e+00> : vector<32x16xf32>
    %155 = tpu.matmul %153, %154, %cst_43 {dimension_numbers = #tpu.dot_dimension_numbers<[1], [0], [0], [1], [0, 0, 1, 1], [], []>} : vector<32x96xbf16>, vector<96x16xbf16>, vector<32x16xf32> -> vector<32x16xf32>
    %cst_44 = arith.constant 0.000000e+00 : f32
    %156 = vector.broadcast %cst_44 : f32 to vector<32x16xf32>
    %157 = arith.cmpf ogt, %155, %156 : vector<32x16xf32>
    %cst_45 = arith.constant 0.000000e+00 : f32
    %158 = vector.broadcast %cst_45 : f32 to vector<32x16xf32>
    %159 = arith.minimumf %155, %158 : vector<32x16xf32>
    %160 = math.exp %159 : vector<32x16xf32>
    %cst_46 = arith.constant 1.000000e+00 : f32
    %161 = vector.broadcast %cst_46 : f32 to vector<32x16xf32>
    %162 = arith.subf %160, %161 : vector<32x16xf32>
    %163 = arith.select %157, %155, %162 : vector<32x16xi1>, vector<32x16xf32>
    %164 = vector.extract_strided_slice %11 {offsets = [0, 5], sizes = [32, 1], strides = [1, 1]} : vector<32x8xf32> to vector<32x1xf32>
    %165 = vector.extract_strided_slice %5 {offsets = [5, 0], sizes = [1, 96], strides = [1, 1]} : vector<8x96xf32> to vector<1x96xf32>
    %166 = vector.broadcast %164 : vector<32x1xf32> to vector<32x96xf32>
    %167 = vector.broadcast %165 : vector<1x96xf32> to vector<32x96xf32>
    %168 = arith.addf %166, %167 : vector<32x96xf32>
    %cst_47 = arith.constant 2.000000e-01 : f32
    %169 = vector.broadcast %cst_47 : f32 to vector<32x96xf32>
    %170 = arith.mulf %169, %168 : vector<32x96xf32>
    %171 = arith.maximumf %168, %170 : vector<32x96xf32>
    %172 = arith.addf %171, %13 : vector<32x96xf32>
    %cst_48 = arith.constant dense<0xFF800000> : vector<32xf32>
    %173 = vector.multi_reduction <maximumf>, %172, %cst_48 [1] : vector<32x96xf32> to vector<32xf32>
    %174 = vector.shape_cast %173 : vector<32xf32> to vector<32x1xf32>
    %175 = vector.broadcast %174 : vector<32x1xf32> to vector<32x96xf32>
    %176 = arith.subf %172, %175 : vector<32x96xf32>
    %177 = math.exp %176 : vector<32x96xf32>
    %cst_49 = arith.constant dense<0.000000e+00> : vector<32xf32>
    %178 = vector.multi_reduction <add>, %177, %cst_49 [1] : vector<32x96xf32> to vector<32xf32>
    %179 = vector.shape_cast %178 : vector<32xf32> to vector<32x1xf32>
    %180 = tpu.reciprocal %179 {approx = true} : vector<32x1xf32> -> vector<32x1xf32>
    %181 = vector.broadcast %180 : vector<32x1xf32> to vector<32x96xf32>
    %182 = arith.mulf %177, %181 : vector<32x96xf32>
    %183 = arith.truncf %182 : vector<32x96xf32> to vector<32x96xbf16>
    %184 = vector.extract_strided_slice %3 {offsets = [0, 80], sizes = [96, 16], strides = [1, 1]} : vector<96x128xbf16> to vector<96x16xbf16>
    %cst_50 = arith.constant dense<0.000000e+00> : vector<32x16xf32>
    %185 = tpu.matmul %183, %184, %cst_50 {dimension_numbers = #tpu.dot_dimension_numbers<[1], [0], [0], [1], [0, 0, 1, 1], [], []>} : vector<32x96xbf16>, vector<96x16xbf16>, vector<32x16xf32> -> vector<32x16xf32>
    %cst_51 = arith.constant 0.000000e+00 : f32
    %186 = vector.broadcast %cst_51 : f32 to vector<32x16xf32>
    %187 = arith.cmpf ogt, %185, %186 : vector<32x16xf32>
    %cst_52 = arith.constant 0.000000e+00 : f32
    %188 = vector.broadcast %cst_52 : f32 to vector<32x16xf32>
    %189 = arith.minimumf %185, %188 : vector<32x16xf32>
    %190 = math.exp %189 : vector<32x16xf32>
    %cst_53 = arith.constant 1.000000e+00 : f32
    %191 = vector.broadcast %cst_53 : f32 to vector<32x16xf32>
    %192 = arith.subf %190, %191 : vector<32x16xf32>
    %193 = arith.select %187, %185, %192 : vector<32x16xi1>, vector<32x16xf32>
    %194 = vector.extract_strided_slice %11 {offsets = [0, 6], sizes = [32, 1], strides = [1, 1]} : vector<32x8xf32> to vector<32x1xf32>
    %195 = vector.extract_strided_slice %5 {offsets = [6, 0], sizes = [1, 96], strides = [1, 1]} : vector<8x96xf32> to vector<1x96xf32>
    %196 = vector.broadcast %194 : vector<32x1xf32> to vector<32x96xf32>
    %197 = vector.broadcast %195 : vector<1x96xf32> to vector<32x96xf32>
    %198 = arith.addf %196, %197 : vector<32x96xf32>
    %cst_54 = arith.constant 2.000000e-01 : f32
    %199 = vector.broadcast %cst_54 : f32 to vector<32x96xf32>
    %200 = arith.mulf %199, %198 : vector<32x96xf32>
    %201 = arith.maximumf %198, %200 : vector<32x96xf32>
    %202 = arith.addf %201, %13 : vector<32x96xf32>
    %cst_55 = arith.constant dense<0xFF800000> : vector<32xf32>
    %203 = vector.multi_reduction <maximumf>, %202, %cst_55 [1] : vector<32x96xf32> to vector<32xf32>
    %204 = vector.shape_cast %203 : vector<32xf32> to vector<32x1xf32>
    %205 = vector.broadcast %204 : vector<32x1xf32> to vector<32x96xf32>
    %206 = arith.subf %202, %205 : vector<32x96xf32>
    %207 = math.exp %206 : vector<32x96xf32>
    %cst_56 = arith.constant dense<0.000000e+00> : vector<32xf32>
    %208 = vector.multi_reduction <add>, %207, %cst_56 [1] : vector<32x96xf32> to vector<32xf32>
    %209 = vector.shape_cast %208 : vector<32xf32> to vector<32x1xf32>
    %210 = tpu.reciprocal %209 {approx = true} : vector<32x1xf32> -> vector<32x1xf32>
    %211 = vector.broadcast %210 : vector<32x1xf32> to vector<32x96xf32>
    %212 = arith.mulf %207, %211 : vector<32x96xf32>
    %213 = arith.truncf %212 : vector<32x96xf32> to vector<32x96xbf16>
    %214 = vector.extract_strided_slice %3 {offsets = [0, 96], sizes = [96, 16], strides = [1, 1]} : vector<96x128xbf16> to vector<96x16xbf16>
    %cst_57 = arith.constant dense<0.000000e+00> : vector<32x16xf32>
    %215 = tpu.matmul %213, %214, %cst_57 {dimension_numbers = #tpu.dot_dimension_numbers<[1], [0], [0], [1], [0, 0, 1, 1], [], []>} : vector<32x96xbf16>, vector<96x16xbf16>, vector<32x16xf32> -> vector<32x16xf32>
    %cst_58 = arith.constant 0.000000e+00 : f32
    %216 = vector.broadcast %cst_58 : f32 to vector<32x16xf32>
    %217 = arith.cmpf ogt, %215, %216 : vector<32x16xf32>
    %cst_59 = arith.constant 0.000000e+00 : f32
    %218 = vector.broadcast %cst_59 : f32 to vector<32x16xf32>
    %219 = arith.minimumf %215, %218 : vector<32x16xf32>
    %220 = math.exp %219 : vector<32x16xf32>
    %cst_60 = arith.constant 1.000000e+00 : f32
    %221 = vector.broadcast %cst_60 : f32 to vector<32x16xf32>
    %222 = arith.subf %220, %221 : vector<32x16xf32>
    %223 = arith.select %217, %215, %222 : vector<32x16xi1>, vector<32x16xf32>
    %224 = vector.extract_strided_slice %11 {offsets = [0, 7], sizes = [32, 1], strides = [1, 1]} : vector<32x8xf32> to vector<32x1xf32>
    %225 = vector.extract_strided_slice %5 {offsets = [7, 0], sizes = [1, 96], strides = [1, 1]} : vector<8x96xf32> to vector<1x96xf32>
    %226 = vector.broadcast %224 : vector<32x1xf32> to vector<32x96xf32>
    %227 = vector.broadcast %225 : vector<1x96xf32> to vector<32x96xf32>
    %228 = arith.addf %226, %227 : vector<32x96xf32>
    %cst_61 = arith.constant 2.000000e-01 : f32
    %229 = vector.broadcast %cst_61 : f32 to vector<32x96xf32>
    %230 = arith.mulf %229, %228 : vector<32x96xf32>
    %231 = arith.maximumf %228, %230 : vector<32x96xf32>
    %232 = arith.addf %231, %13 : vector<32x96xf32>
    %cst_62 = arith.constant dense<0xFF800000> : vector<32xf32>
    %233 = vector.multi_reduction <maximumf>, %232, %cst_62 [1] : vector<32x96xf32> to vector<32xf32>
    %234 = vector.shape_cast %233 : vector<32xf32> to vector<32x1xf32>
    %235 = vector.broadcast %234 : vector<32x1xf32> to vector<32x96xf32>
    %236 = arith.subf %232, %235 : vector<32x96xf32>
    %237 = math.exp %236 : vector<32x96xf32>
    %cst_63 = arith.constant dense<0.000000e+00> : vector<32xf32>
    %238 = vector.multi_reduction <add>, %237, %cst_63 [1] : vector<32x96xf32> to vector<32xf32>
    %239 = vector.shape_cast %238 : vector<32xf32> to vector<32x1xf32>
    %240 = tpu.reciprocal %239 {approx = true} : vector<32x1xf32> -> vector<32x1xf32>
    %241 = vector.broadcast %240 : vector<32x1xf32> to vector<32x96xf32>
    %242 = arith.mulf %237, %241 : vector<32x96xf32>
    %243 = arith.truncf %242 : vector<32x96xf32> to vector<32x96xbf16>
    %244 = vector.extract_strided_slice %3 {offsets = [0, 112], sizes = [96, 16], strides = [1, 1]} : vector<96x128xbf16> to vector<96x16xbf16>
    %cst_64 = arith.constant dense<0.000000e+00> : vector<32x16xf32>
    %245 = tpu.matmul %243, %244, %cst_64 {dimension_numbers = #tpu.dot_dimension_numbers<[1], [0], [0], [1], [0, 0, 1, 1], [], []>} : vector<32x96xbf16>, vector<96x16xbf16>, vector<32x16xf32> -> vector<32x16xf32>
    %cst_65 = arith.constant 0.000000e+00 : f32
    %246 = vector.broadcast %cst_65 : f32 to vector<32x16xf32>
    %247 = arith.cmpf ogt, %245, %246 : vector<32x16xf32>
    %cst_66 = arith.constant 0.000000e+00 : f32
    %248 = vector.broadcast %cst_66 : f32 to vector<32x16xf32>
    %249 = arith.minimumf %245, %248 : vector<32x16xf32>
    %250 = math.exp %249 : vector<32x16xf32>
    %cst_67 = arith.constant 1.000000e+00 : f32
    %251 = vector.broadcast %cst_67 : f32 to vector<32x16xf32>
    %252 = arith.subf %250, %251 : vector<32x16xf32>
    %253 = arith.select %247, %245, %252 : vector<32x16xi1>, vector<32x16xf32>
    %254 = tpu.concatenate %43, %73, %103, %133, %163, %193, %223, %253 in 1 : vector<32x16xf32>, vector<32x16xf32>, vector<32x16xf32>, vector<32x16xf32>, vector<32x16xf32>, vector<32x16xf32>, vector<32x16xf32>, vector<32x16xf32> -> vector<32x128xf32>
    %255 = arith.truncf %254 : vector<32x128xf32> to vector<32x128xbf16>
    %c0_68 = arith.constant 0 : index
    %c0_69 = arith.constant 0 : index
    %256 = vector.load %arg6[%c0_68, %c0_69] : memref<32x128xbf16, #tpu.memory_space<vmem>>, vector<32x128xbf16>
    tpu.vector_store %arg6[%c0_68, %c0_69], %255 {strides = array<i32>} : memref<32x128xbf16, #tpu.memory_space<vmem>>, vector<32x128xbf16>,
    return
  }
  func.func @transform_0(%arg0: i32) -> (i32, i32) {
    %c0_i32 = arith.constant 0 : i32
    %c0_i32_0 = arith.constant 0 : i32
    %c0_i32_1 = arith.constant 0 : i32
    return %c0_i32, %c0_i32_0 : i32, i32
  }
  func.func @transform_1(%arg0: i32) -> (i32, i32) {
    %c0_i32 = arith.constant 0 : i32
    %c0_i32_0 = arith.constant 0 : i32
    %c0_i32_1 = arith.constant 0 : i32
    return %c0_i32, %c0_i32_0 : i32, i32
  }
  func.func @transform_2(%arg0: i32) -> (i32, i32) {
    %c0_i32 = arith.constant 0 : i32
    %c0_i32_0 = arith.constant 0 : i32
    %c0_i32_1 = arith.constant 0 : i32
    return %c0_i32, %c0_i32_0 : i32, i32
  }
  func.func @transform_3(%arg0: i32) -> (i32, i32) {
    %c0_i32 = arith.constant 0 : i32
    %c0_i32_0 = arith.constant 0 : i32
    %c0_i32_1 = arith.constant 0 : i32
    return %c0_i32, %c0_i32_0 : i32, i32
  }
  func.func @transform_4(%arg0: i32) -> (i32, i32) {
    %c0_i32 = arith.constant 0 : i32
    %c0_i32_0 = arith.constant 0 : i32
    return %arg0, %c0_i32 : i32, i32
  }
  func.func @transform_5(%arg0: i32) -> (i32, i32) {
    %c0_i32 = arith.constant 0 : i32
    %c0_i32_0 = arith.constant 0 : i32
    return %arg0, %c0_i32 : i32, i32
  }
}

</mosaic_0001>

<bundles_post_ra>
// kernel: tpu_custom_call.1
= control target key start
LH: loop header
LB: loop body
LE: loop exit
PB: predicated region body
PF: predicated region fallthrough
CT: control target
= control target key end

     0   :  { %10 = vsyncpa [#allocation3], 0  ;;  %s4110_s0 = inlined_call_operand.vmem [shape: bf16[96,64], index: 0, kind: input, shape index: {}]   ;;  %s4111_s1 = inlined_call_operand.vmem [shape: bf16[64,128], index: 1, kind: input, shape index: {}]   ;;  %s4112_s2 = inlined_call_operand.vmem [shape: bf16[64,8], index: 2, kind: input, shape index: {}]   ;;  %s4113_s3 = inlined_call_operand.vmem [shape: bf16[8,64], index: 3, kind: input, shape index: {}]   ;;  %s4114_s4 = inlined_call_operand.vmem [shape: bf16[96,96], index: 4, kind: input, shape index: {}]   ;;  %s4115_s5 = inlined_call_operand.hbm [shape: bf16[96,128], index: 5, kind: output, shape index: {}]  }
   0x1   :  { %12 = vsyncpa [#allocation3 + $0x1], 0  ;;  %s3093_s18 = smov 0   ;;  %s3095_s19 = smov 0  }
   0x2   :  { %s3097_s20 = smov 0   ;;  %s3099_s21 = smov 0  }
   0x3 LB: > { %s3114_s22 = sadd.s32 4294967295, %s3042_s21   ;;  %s2233_s23 = sadd.s32 4294967294, %s3042_s21   ;;  %s3042_s21 = sphi %s3099_s21, %s4191_s21   ;;  %s3038_s20 = sphi %s3097_s20, %s4190_s20   ;;  %s3034_s19 = sphi %s3095_s19, %s4189_s19   ;;  %s3030_s18 = sphi %s3093_s18, %s4188_s18  }
   0x4   : > { %s3118_s24 = sadd.s32 1, %s3042_s21   ;;  %s135_s25 = sadd.s32 1, %s3038_s20 }
   0x5   : > { %s132_s26 = ssub.s32 %s3042_s21, %s3118_s24  ;;  %p145_p0 = scmp.ne.s32.totalorder %s3038_s20, %s3034_s19 }
   0x6   : > { %p133_p1 = scmp.eq.s32.totalorder %s132_s26, 0  ;;  %p146_p2 = scmp.eq.s32.totalorder %s3114_s22, 2 }
   0x7   : > { %p151_p3 = scmp.ne.s32.totalorder %s3034_s19, %s3030_s18  ;;  %p152_p4 = scmp.eq.s32.totalorder %s2233_s23, 2 }
   0x8   : > { %s3129_s27 = scalar_select %p133_p1, %s3038_s20, %s135_s25  }
   0x9   : > { %p3131_p5 = por %p146_p2, %p145_p0  ;;  %p3135_p6 = por %p152_p4, %p151_p3 }
   0xa   : > { %p2236_p7 = scmp.ge.s32.totalorder %s3042_s21, 1  ;;  %p191_p8 = scmp.lt.s32.totalorder %s3042_s21, 4 }
   0xc   : > { %p192_p9 = pnand %p2236_p7, %p191_p8 }
   0xe   : > { %195 = sbr.rel (%p192_p9) target bundleno = 1350 (0x546), region = 40 }
  0x15   : > { %v2772_v0 = vld [vmem:[%s4111_s1] sm:$0xff]   ;;  %v2773_v1 = vld [vmem:[%s4111_s1 + $0x8] sm:$0xff]   ;;  %vm301_vm0 = vcmask 523264   ;;  %v2774_v2 = vld [vmem:[%s4111_s1 + $0x10] sm:$0xff]   ;;  %s2257_s11 = sshll.u32 %s3114_s22, 5  ;;  %v3044_v4 = vmov 0.0  }
  0x16   : > { %2436 = vmatprep.subr.bf16.mxu0 %v2772_v0  ;;  %v2776_v3 = vld [vmem:[%s4110_s0] sm:$0xff]   ;;  %2456 = vmatprep.subr.bf16.mxu1 %v3044_v4  ;;  %vm3045_vm1 = vmmov 0   ;;  %s452_s14 = sshra.s32 %s2257_s11, 3  ;;  %v2775_v6 = vld [vmem:[%s4111_s1 + $0x18] sm:$0xff]   ;;  %v2777_v7 = vld [vmem:[%s4110_s0 + $0x8] sm:$0xff]   ;;  %v3046_v24 = vmov 0  }
  0x17   : > { %2437 = vmatpush3.bf16.msra.mxu0 %v2772_v0  ;;  %2444 = vmatprep.mubr.msk.bf16.mxu0 %vm301_vm0, %v2776_v3  ;;  %v303_v5 = vsel %vm301_vm0, %v2776_v3, 0  ;;  %s2258_s25 = sshll.u32 %s452_s14, 2  ;;  %v2782_v8 = vld [vmem:[%s4112_s2] sm:$0xff]   ;;  %v306_v9 = vsel %vm301_vm0, %v2777_v7, 0  ;;  %v2778_v10 = vld [vmem:[%s4110_s0 + $0x10] sm:$0xff]   ;;  %v2783_v11 = vld [vmem:[%s4112_s2 + $0x8] sm:$0xff]  }
  0x18   : > { %2438 = vmatprep.subr.bf16.mxu0 %v2773_v1  ;;  %2468 = vmatprep.mubr.msk.bf16.mxu1 %vm3045_vm1, %v3044_v4  ;;  %s3169_s8 = scalar_lea.vmem %s4110_s0, %s2258_s25  ;;  %v2784_v12 = vld [vmem:[%s4112_s2 + $0x10] sm:$0xff]   ;;  %v309_v13 = vsel %vm301_vm0, %v2778_v10, 0  ;;  %v2779_v14 = vld [vmem:[%s4110_s0 + $0x18] sm:$0xff]   ;;  %v2780_v15 = vld [vmem:[%s4110_s0 + $0x20] sm:$0xff]   ;;  %s3048_s10 = smov 112   ;;  %v3054_v51 = vmov 1  }
  0x19   : > { %2457 = vmatpush3.bf16.xpose.msra.mxu1 %v303_v5  ;;  %v2785_v16 = vld [vmem:[%s4112_s2 + $0x18] sm:$0xff]   ;;  %v312_v17 = vsel %vm301_vm0, %v2779_v14, 0  ;;  %v2781_v18 = vld [vmem:[%s4110_s0 + $0x28] sm:$0xff]   ;;  %v2786_v19 = vld [vmem:[%s3169_s8] sm:$0xff]   ;;  %v315_v20 = vsel %vm301_vm0, %v2780_v15, 0  ;;  %2669 = vset.pattern.permute.xlu1 %v3046_v24  ;;  %s3049_s11 = smov 48  }
  0x1a   : > { %2458 = vmatprep.subr.bf16.mxu1 %v3044_v4  ;;  %v2787_v21 = vld [vmem:[%s3169_s8 + $0x8] sm:$0xff]   ;;  %v318_v22 = vsel %vm301_vm0, %v2781_v18, 0  ;;  %v407_v23 = vld [vmem:[%s4113_s3] sm:$0xf]  ;;  %2677 = vset.pattern.permute.xlu0 %v3046_v24  ;;  %s3047_s8 = smov 64   ;;  %s3050_s12 = smov 96  }
  0x1b   : > { %2439 = vmatpush3.bf16.msra.mxu0 %v2773_v1  ;;  %s3051_s13 = smov 16   ;;  %s3052_s14 = smov 80   ;;  %v3055_v52 = vmov 2   ;;  %v3056_v53 = vmov 3   ;;  %v3057_v54 = vmov 4   ;;  %v3058_v55 = vmov 5  }
  0x1c   : > { %2440 = vmatprep.subr.bf16.mxu0 %v2774_v2  ;;  %s3053_s15 = smov 32   ;;  %v3059_v56 = vmov 7   ;;  %v3060_v57 = vmov 6   ;;  %s2238_s16 = sshll.u32 %s3114_s22, 2  ;;  %vm605_vm2 = vcmask 785408  }
  0x1d   : > { %p220_p10 = scmp.lt.s32.totalorder %s2238_s16, 11  ;;  %s216_s30 = sand.u32 1, %s3034_s19  }
  0x1e   : > { %s2237_s6 = sshll.u32 %s216_s30, 4  ;;  %s2328_s7 = sshll.u32 %s3114_s22, 8 }
  0x1f   : > { %2441 = vmatpush3.bf16.msra.mxu0 %v2774_v2  ;;  %s4193_s16 = smov (!%p220_p10, %s2238_s16), 11  ;;  %s218_s9 = scalar_lea.vmem [#allocation2], %s2237_s6 }
  0x20   : > { %2442 = vmatprep.subr.bf16.mxu0 %v2775_v6  ;;  %s2239_s17 = sshll.u32 %s4193_s16, 2 }
  0x21   : > { %2459 = vmatpush3.bf16.xpose.msra.mxu1 %v306_v9  ;;  %s223_s26 = scalar_lea.vmem %s4114_s4, %s2239_s17 }
  0x22   : > { %2460 = vmatprep.subr.bf16.mxu1 %v3044_v4 }
  0x23   : > { %2443 = vmatpush3.bf16.msra.mxu0 %v2775_v6 }
  0x24   : > { %2472 = vmatprep.subr.bf16.mxu0 %v2782_v8 }
  0x26   : > { %2445 = vmatmul.mubr.msk.bf16.vlgmr.msra.gmra.mrb[0].mxu0 %vm301_vm0, %v2777_v7 }
  0x27   : > { %2448 = vmatprep.mubr.msk.bf16.mxu0 %vm301_vm0, %v2778_v10  ;;  %2473 = vmatpush3.bf16.msra.mxu0 %v2782_v8 }
  0x28   : > { %2474 = vmatprep.subr.bf16.mxu0 %v2783_v11 }
  0x29   : > { %2461 = vmatpush3.bf16.xpose.msra.mxu1 %v309_v13 }
  0x2a   : > { %2462 = vmatprep.subr.bf16.mxu1 %v3044_v4 }
  0x2b   : > { %2475 = vmatpush3.bf16.msra.mxu0 %v2783_v11 }
  0x2c   : > { %2476 = vmatprep.subr.bf16.mxu0 %v2784_v12 }
  0x2e   : > { %2449 = vmatmul.mubr.msk.bf16.gmra.mrb[4].mxu0 %vm301_vm0, %v2779_v14 }
  0x2f   : > { %2452 = vmatprep.mubr.msk.bf16.mxu0 %vm301_vm0, %v2780_v15  ;;  %2477 = vmatpush3.bf16.msra.mxu0 %v2784_v12 }
  0x30   : > { %2478 = vmatprep.subr.bf16.mxu0 %v2785_v16 }
  0x31   : > { %2463 = vmatpush3.bf16.xpose.msra.mxu1 %v312_v17 }
  0x32   : > { %2464 = vmatprep.subr.bf16.mxu1 %v3044_v4 }
  0x33   : > { %2479 = vmatpush3.bf16.msra.mxu0 %v2785_v16 }
  0x36   : > { %2453 = vmatmul.mubr.msk.bf16.gmra.mrb[8].mxu0 %vm301_vm0, %v2781_v18 }
  0x37   : > { %2480 = vmatprep.mubr.msk.bf16.mxu0 %vm301_vm0, %v2786_v19 }
  0x39   : > { %2465 = vmatpush3.bf16.xpose.msra.mxu1 %v315_v20 }
  0x3a   : > { %2466 = vmatprep.subr.bf16.mxu1 %v3044_v4 }
  0x3e   : > { %2481 = vmatmul.mubr.msk.bf16.vlgmr.msra.gmra.mrb[12].mxu0 %vm301_vm0, %v2787_v21 }
  0x41   : > { %2467 = vmatpush3.bf16.xpose.msra.mxu1 %v318_v22 }
  0x48   : > { %2469 = vmatmul.mubr.msk.bf16.vlgmr.msra.gmra.mrb[0].mxu1 %vm301_vm0, %v407_v23 }
  0xf9   : > { %v2446_v25 = vpop.f32.mrb[0].mxu0 }
  0xfa   : > { %v354_v26 = vpop.f32.mrb[1].mxu0 }
  0xfb   : > { %v2447_v27 = vpop.f32.mrb[2].mxu0 }
  0xfc   : > { %v402_v28 = vpack.c.bf16 %v2447_v27, %v2446_v25  ;;  %v357_v29 = vpop.f32.mrb[3].mxu0 }
  0xfd   : > { %v401_v30 = vpack.c.bf16 %v357_v29, %v354_v26 }
  0xfe   : > { %1358 = vrot.lane.b32.xlu0 %v402_v28, %s3047_s8  ;;  %821 = vrot.lane.b32.xlu1 %v402_v28, %s3048_s10 }
  0xff   : > { %2484 = vmatprep.subr.bf16.mxu0 %v401_v30 }
 0x100   : > { %2485 = vmatpush3.bf16.msra.mxu0 %v401_v30 }
 0x101   : > { %2486 = vmatprep.subr.bf16.mxu0 %v402_v28  ;;  %v2450_v31 = vpop.f32.mrb[4].mxu0 }
 0x102   : > { %1537 = vrot.lane.b32.xlu0 %v402_v28, %s3049_s11  ;;  %1000 = vrot.lane.b32.xlu1 %v402_v28, %s3050_s12  ;;  %v370_v32 = vpop.f32.mrb[5].mxu0 }
 0x103   : > { %v2451_v33 = vpop.f32.mrb[6].mxu0 }
 0x104   : > { %2487 = vmatpush3.bf16.msra.mxu0 %v402_v28  ;;  %v3215_v34 = vpack.c.bf16 %v2451_v33, %v2450_v31  ;;  %v373_v35 = vpop.f32.mrb[7].mxu0 }
 0x105   : > { %v403_v36 = vpack.c.bf16 %v373_v35, %v370_v32 }
 0x106   : > { %1895 = vrot.lane.b32.xlu0 %v402_v28, %s3051_s13  ;;  %1179 = vrot.lane.b32.xlu1 %v402_v28, %s3052_s14 }
 0x107   : > { %2488 = vmatprep.subr.bf16.mxu0 %v403_v36 }
 0x108   : > { %2489 = vmatpush3.bf16.msra.mxu0 %v403_v36 }
 0x109   : > { %2490 = vmatprep.subr.bf16.mxu0 %v3215_v34  ;;  %v2454_v37 = vpop.f32.mrb[8].mxu0 }
 0x10a   : > { %1716 = vrot.lane.b32.xlu1 %v402_v28, %s3053_s15  ;;  %819 = vrot.lane.b32.xlu0 %v401_v30, %s3048_s10  ;;  %v386_v38 = vpop.f32.mrb[9].mxu0 }
 0x10b   : > { %v2455_v39 = vpop.f32.mrb[10].mxu0 }
 0x10c   : > { %2491 = vmatpush3.bf16.msra.mxu0 %v3215_v34  ;;  %v3223_v40 = vpack.c.bf16 %v2455_v39, %v2454_v37  ;;  %v389_v41 = vpop.f32.mrb[11].mxu0 }
 0x10d   : > { %v3225_v42 = vpack.c.bf16 %v389_v41, %v386_v38 }
 0x10e   : > { %1177 = vrot.lane.b32.xlu1 %v401_v30, %s3052_s14  ;;  %998 = vrot.lane.b32.xlu0 %v401_v30, %s3050_s12 }
 0x10f   : > { %2492 = vmatprep.subr.bf16.mxu0 %v3225_v42 }
 0x110   : > { %2493 = vmatpush3.bf16.msra.mxu0 %v3225_v42 }
 0x111   : > { %2494 = vmatprep.subr.bf16.mxu0 %v3223_v40  ;;  %v3232_v43 = vpop.f32.mrb[12].mxu0 }
 0x112   : > { %1535 = vrot.lane.b32.xlu1 %v401_v30, %s3049_s11  ;;  %1356 = vrot.lane.b32.xlu0 %v401_v30, %s3047_s8  ;;  %v3236_v44 = vpop.f32.mrb[13].mxu0 }
 0x113   : > { %v3238_v45 = vpop.f32.mrb[14].mxu0 }
 0x114   : > { %2495 = vmatpush3.bf16.msra.mxu0 %v3223_v40  ;;  %v3241_v46 = vpop.f32.mrb[15].mxu0 }
 0x116   : > { %1714 = vrot.lane.b32.xlu0 %v401_v30, %s3053_s15  ;;  %1004 = vrot.lane.b32.xlu1 %v3215_v34, %s3050_s12 }
 0x11a   : > { %1893 = vrot.lane.b32.xlu0 %v401_v30, %s3051_s13  ;;  %1362 = vrot.lane.b32.xlu1 %v3215_v34, %s3047_s8 }
 0x11b   : > { %v3270_v47 = vpop.f32.mrb[0].mxu1 }
 0x11c   : > { %v2470_v48 = vpop.f32.mrb[1].mxu1 }
 0x11d   : > { %v448_v49 = vpop.f32.mrb[2].mxu1 }
 0x11e   : > { %825 = vrot.lane.b32.xlu0 %v3215_v34, %s3048_s10  ;;  %823 = vrot.lane.b32.xlu1 %v403_v36, %s3048_s10  ;;  %v2471_v50 = vpop.f32.mrb[3].mxu1 }
 0x122   : > { %1183 = vrot.lane.b32.xlu0 %v3215_v34, %s3052_s14  ;;  %1002 = vrot.lane.b32.xlu1 %v403_v36, %s3050_s12 }
 0x126   : > { %1541 = vrot.lane.b32.xlu0 %v3215_v34, %s3049_s11  ;;  %1718 = vrot.lane.b32.xlu1 %v403_v36, %s3053_s15 }
 0x12a   : > { %1181 = vrot.lane.b32.xlu0 %v403_v36, %s3052_s14  ;;  %829 = vrot.lane.b32.xlu1 %v3223_v40, %s3048_s10 }
 0x12e   : > { %1360 = vrot.lane.b32.xlu0 %v403_v36, %s3047_s8  ;;  %1187 = vrot.lane.b32.xlu1 %v3223_v40, %s3052_s14 }
 0x132   : > { %1539 = vrot.lane.b32.xlu0 %v403_v36, %s3049_s11  ;;  %1545 = vrot.lane.b32.xlu1 %v3223_v40, %s3049_s11 }
 0x136   : > { %1897 = vrot.lane.b32.xlu0 %v403_v36, %s3051_s13  ;;  %827 = vrot.lane.b32.xlu1 %v3225_v42, %s3048_s10  ;;  %v3406_v36 = vld [vmem:[%s223_s26 + $0x8] sm:$0xff]  }
 0x13a   : > { %1008 = vrot.lane.b32.xlu0 %v3223_v40, %s3050_s12  ;;  %1006 = vrot.lane.b32.xlu1 %v3225_v42, %s3050_s12 }
 0x13e   : > { %1366 = vrot.lane.b32.xlu0 %v3223_v40, %s3047_s8  ;;  %1364 = vrot.lane.b32.xlu1 %v3225_v42, %s3047_s8 }
 0x142   : > { %1185 = vrot.lane.b32.xlu0 %v3225_v42, %s3052_s14  ;;  %577 = vperm.xlu1 %2669, %v3232_v43  }
 0x146   : > { %1543 = vrot.lane.b32.xlu0 %v3225_v42, %s3049_s11  ;;  %2670 = vset.pattern.permute.xlu1 %v3054_v51 }
 0x147   : > { %740 = vperm.xlu1 %2670, %v3232_v43  }
 0x14a   : > { %567 = vperm.xlu0 %2677, %v3236_v44  }
 0x14b   : > { %2671 = vset.pattern.permute.xlu1 %v3055_v52 }
 0x14c   : > { %925 = vperm.xlu1 %2671, %v3232_v43  }
 0x14e   : > { %2678 = vset.pattern.permute.xlu0 %v3054_v51 }
 0x14f   : > { %732 = vperm.xlu0 %2678, %v3236_v44  }
 0x150   : > { %2672 = vset.pattern.permute.xlu1 %v3056_v53 }
 0x151   : > { %1104 = vperm.xlu1 %2672, %v3232_v43  }
 0x153   : > { %2680 = vset.pattern.permute.xlu0 %v3056_v53 }
 0x154   : > { %1096 = vperm.xlu0 %2680, %v3236_v44  }
 0x155   : > { %2673 = vset.pattern.permute.xlu1 %v3057_v54 }
 0x156   : > { %1283 = vperm.xlu1 %2673, %v3232_v43  }
 0x158   : > { %2682 = vset.pattern.permute.xlu0 %v3058_v55 }
 0x159   : > { %1454 = vperm.xlu0 %2682, %v3236_v44  }
 0x15a   : > { %2674 = vset.pattern.permute.xlu1 %v3058_v55 }
 0x15b   : > { %1462 = vperm.xlu1 %2674, %v3232_v43  }
 0x15d   : > { %2684 = vset.pattern.permute.xlu0 %v3059_v56 }
 0x15e   : > { %1812 = vperm.xlu0 %2684, %v3236_v44  }
 0x15f   : > { %2675 = vset.pattern.permute.xlu1 %v3060_v57 }
 0x160   : > { %1641 = vperm.xlu1 %2675, %v3232_v43  }
 0x162   : > { %2686 = vset.pattern.permute.xlu0 %v3054_v51 }
 0x163   : > { %744 = vperm.xlu0 %2686, %v3238_v45  }
 0x164   : > { %2676 = vset.pattern.permute.xlu1 %v3059_v56 }
 0x165   : > { %1820 = vperm.xlu1 %2676, %v3232_v43   ;;  %v3414_v43 = vunpack.c.l.bf16 %v3406_v36 }
 0x167   : > { %2688 = vset.pattern.permute.xlu0 %v3056_v53 }
 0x168   : > { %1108 = vperm.xlu0 %2688, %v3238_v45  }
 0x169   : > { %2679 = vset.pattern.permute.xlu1 %v3055_v52 }
 0x16a   : > { %917 = vperm.xlu1 %2679, %v3236_v44  }
 0x16c   : > { %2690 = vset.pattern.permute.xlu0 %v3058_v55 }
 0x16d   : > { %1466 = vperm.xlu0 %2690, %v3238_v45  }
 0x16e   : > { %2681 = vset.pattern.permute.xlu1 %v3057_v54 }
 0x16f   : > { %1275 = vperm.xlu1 %2681, %v3236_v44  }
 0x170   : > { %v3313_v58 = vpop.permute.xlu0 %1358  ;;  %v822_v59 = vpop.permute.xlu1 %821 }
 0x171   : > { %4140 = vst [vmem:[#allocation5_spill] sm:$0xff] %v3313_v58  ;;  %2692 = vset.pattern.permute.xlu0 %v3059_v56 }
 0x172   : > { %1824 = vperm.xlu0 %2692, %v3238_v45  }
 0x173   : > { %2683 = vset.pattern.permute.xlu1 %v3060_v57 }
 0x174   : > { %v3317_v60 = vpop.permute.xlu0 %1537  ;;  %v3319_v61 = vpop.permute.xlu1 %1000  ;;  %1633 = vperm.xlu1 %2683, %v3236_v44  }
 0x175   : > { %4141 = vst [vmem:[#allocation6_spill] sm:$0xff] %v3317_v60 }
 0x176   : > { %2693 = vset.pattern.permute.xlu0 %v3046_v24 }
 0x177   : > { %572 = vperm.xlu0 %2693, %v3241_v46  }
 0x178   : > { %v3324_v62 = vpop.permute.xlu0 %1895  ;;  %v3326_v63 = vpop.permute.xlu1 %1179  ;;  %2685 = vset.pattern.permute.xlu1 %v3046_v24  ;;  %v585_v24 = vlaneseq }
 0x179   : > { %4142 = vst [vmem:[#allocation7_spill] sm:$0xff] %v3324_v62  ;;  %582 = vperm.xlu1 %2685, %v3238_v45  }
 0x17a   : > { %v3388_v26 = vshrl.u32 %v585_v24, 7 }
 0x17b   : > { %2695 = vset.pattern.permute.xlu0 %v3055_v52 }
 0x17c   : > { %v3330_v0 = vpop.permute.xlu1 %1716  ;;  %v820_v1 = vpop.permute.xlu0 %819  ;;  %921 = vperm.xlu0 %2695, %v3241_v46   ;;  %v587_v29 = vsub.s32 0, %v3388_v26  ;;  %v749_v33 = vsub.s32 1, %v3388_v26  ;;  %v934_v41 = vsub.s32 2, %v3388_v26 }
 0x17d   : > { %4143 = vst [vmem:[#allocation8_spill] sm:$0xff] %v3330_v0  ;;  %2687 = vset.pattern.permute.xlu1 %v3055_v52  ;;  %2500 = vmatprep.subr.bf16.mxu1 %v820_v1 }
 0x17e   : > { %929 = vperm.xlu1 %2687, %v3238_v45   ;;  %2501 = vmatpush3.bf16.msra.mxu1 %v820_v1  ;;  %v3398_v31 = vrot.slane %v3270_v47, %v587_v29  ;;  %v3410_v38 = vrot.slane %v3270_v47, %v749_v33  ;;  %v3420_v49 = vrot.slane %v3270_v47, %v934_v41 }
 0x17f   : > { %2502 = vmatprep.subr.bf16.mxu1 %v822_v59 }
 0x180   : > { %v3334_v2 = vpop.permute.xlu1 %1177  ;;  %v3336_v3 = vpop.permute.xlu0 %998  ;;  %2697 = vset.pattern.permute.xlu0 %v3057_v54 }
 0x181   : > { %1279 = vperm.xlu0 %2697, %v3241_v46   ;;  %2516 = vmatprep.subr.bf16.mxu0 %v3336_v3 }
 0x182   : > { %2689 = vset.pattern.permute.xlu1 %v3057_v54  ;;  %2503 = vmatpush3.bf16.msra.mxu1 %v822_v59  ;;  %v3426_v54 = vld [vmem:[%s223_s26] sm:$0xff]  }
 0x183   : > { %1287 = vperm.xlu1 %2689, %v3238_v45  }
 0x184   : > { %v3341_v4 = vpop.permute.xlu1 %1535  ;;  %v3343_v5 = vpop.permute.xlu0 %1356 }
 0x185   : > { %4144 = vst [vmem:[#allocation9_spill] sm:$0xff] %v3341_v4  ;;  %4145 = vst [vmem:[#allocation10_spill] sm:$0xff] %v3343_v5  ;;  %2699 = vset.pattern.permute.xlu0 %v3060_v57 }
 0x186   : > { %1637 = vperm.xlu0 %2699, %v3241_v46  }
 0x187   : > { %2691 = vset.pattern.permute.xlu1 %v3060_v57 }
 0x188   : > { %v3346_v6 = vpop.permute.xlu0 %1714  ;;  %v3348_v7 = vpop.permute.xlu1 %1004  ;;  %1645 = vperm.xlu1 %2691, %v3238_v45  }
 0x189   : > { %4146 = vst [vmem:[#allocation11_spill] sm:$0xff] %v3346_v6 }
 0x18a   : > { %2771 = vset.pattern.permute.xlu0 %v3059_v56 }
 0x18c   : > { %v3352_v8 = vpop.permute.xlu0 %1893  ;;  %v3354_v9 = vpop.permute.xlu1 %1362  ;;  %2694 = vset.pattern.permute.xlu1 %v3054_v51 }
 0x18d   : > { %4147 = vst [vmem:[#allocation12_spill] sm:$0xff] %v3352_v8  ;;  %4148 = vst [vmem:[#allocation13_spill] sm:$0xff] %v3354_v9  ;;  %736 = vperm.xlu1 %2694, %v3241_v46  }
 0x190   : > { %v826_v10 = vpop.permute.xlu0 %825  ;;  %v824_v11 = vpop.permute.xlu1 %823 }
 0x191   : > { %2696 = vset.pattern.permute.xlu1 %v3056_v53  ;;  %2504 = vmatprep.subr.bf16.mxu1 %v824_v11  ;;  %v1113_v53 = vsub.s32 3, %v3388_v26 }
 0x192   : > { %1100 = vperm.xlu1 %2696, %v3241_v46   ;;  %2505 = vmatpush3.bf16.msra.mxu1 %v824_v11  ;;  %v3433_v11 = vunpack.c.l.bf16 %v3426_v54 }
 0x193   : > { %2506 = vmatprep.subr.bf16.mxu1 %v826_v10 }
 0x194   : > { %v3360_v12 = vpop.permute.xlu0 %1183  ;;  %v3362_v13 = vpop.permute.xlu1 %1002 }
 0x196   : > { %2698 = vset.pattern.permute.xlu1 %v3058_v55  ;;  %2507 = vmatpush3.bf16.msra.mxu1 %v826_v10 }
 0x197   : > { %1458 = vperm.xlu1 %2698, %v3241_v46  }
 0x198   : > { %v3366_v14 = vpop.permute.xlu0 %1541  ;;  %v3368_v15 = vpop.permute.xlu1 %1718 }
 0x199   : > { %4149 = vst [vmem:[#allocation14_spill] sm:$0xff] %v3366_v14  ;;  %4150 = vst [vmem:[#allocation15_spill] sm:$0xff] %v3368_v15  ;;  %v1829_v15 = vsub.s32 7, %v3388_v26 }
 0x19b   : > { %2700 = vset.pattern.permute.xlu1 %v3059_v56 }
 0x19c   : > { %v3371_v16 = vpop.permute.xlu0 %1181  ;;  %v830_v17 = vpop.permute.xlu1 %829  ;;  %1816 = vperm.xlu1 %2700, %v3241_v46  }
 0x1a0   : > { %v3374_v18 = vpop.permute.xlu1 %1187  ;;  %v3376_v19 = vpop.permute.xlu0 %1360 }
 0x1a1   : > { %4151 = vst [vmem:[#allocation16_spill] sm:$0xff] %v3376_v19 }
 0x1a4   : > { %v3378_v20 = vpop.permute.xlu1 %1545  ;;  %v3380_v21 = vpop.permute.xlu0 %1539 }
 0x1a5   : > { %4152 = vst [vmem:[#allocation17_spill] sm:$0xff] %v3378_v20  ;;  %4153 = vst [vmem:[#allocation18_spill] sm:$0xff] %v3380_v21 }
 0x1a8   : > { %v828_v22 = vpop.permute.xlu1 %827  ;;  %v3382_v23 = vpop.permute.xlu0 %1897 }
 0x1a9   : > { %2508 = vmatprep.subr.bf16.mxu1 %v828_v22  ;;  %4154 = vst [vmem:[#allocation19_spill] sm:$0xff] %v3382_v23 }
 0x1aa   : > { %2509 = vmatpush3.bf16.msra.mxu1 %v828_v22 }
 0x1ab   : > { %2510 = vmatprep.subr.bf16.mxu1 %v830_v17 }
 0x1ac   : > { %v3386_v25 = vpop.permute.xlu0 %1008  ;;  %v3390_v27 = vpop.permute.xlu1 %1006 }
 0x1ae   : > { %2511 = vmatpush3.bf16.msra.mxu1 %v830_v17  ;;  %v3436_v17 = vrot.slane %v3270_v47, %v1113_v53 }
 0x1af   : > { %2532 = vmatprep.subr.bf16.mxu1 %v3334_v2 }
 0x1b0   : > { %v3392_v28 = vpop.permute.xlu0 %1366  ;;  %v3395_v30 = vpop.permute.xlu1 %1364 }
 0x1b1   : > { %4155 = vst [vmem:[#allocation20_spill] sm:$0xff] %v3392_v28  ;;  %4156 = vst [vmem:[#allocation21_spill] sm:$0xff] %v3395_v30 }
 0x1b4   : > { %v3403_v32 = vpop.permute.xlu0 %1185 }
 0x1b8   : > { %v3416_v44 = vpop.permute.xlu0 %1543 }
 0x1b9   : > { %4157 = vst [vmem:[#allocation22_spill] sm:$0xff] %v3416_v44 }
 0x1c1   : > { %v578_v35 = vpop.permute.xlu1 %577 }
 0x1c2   : > { %v591_v37 = vadd.f32 %v3398_v31, %v578_v35  ;;  %v1292_v35 = vsub.s32 4, %v3388_v26 }
 0x1c4   : > { %v595_v39 = vmul.f32 0.2, %v591_v37 }
 0x1c6   : > { %v599_v45 = vmax.f32 %v591_v37, %v595_v39  ;;  %v741_v46 = vpop.permute.xlu1 %740 }
 0x1c7   : > { %v753_v48 = vadd.f32 %v3410_v38, %v741_v46 }
 0x1c8   : > { %v3423_v50 = vadd.f32 %v3414_v43, %v599_v45 }
 0x1c9   : > { %v757_v51 = vmul.f32 0.2, %v753_v48  ;;  %v568_v52 = vpop.permute.xlu0 %567 }
 0x1ca   : > { %v589_v55 = vadd.f32 %v3398_v31, %v568_v52  ;;  %v612_v56 = vsel %vm605_vm2, %v3423_v50, -inf }
 0x1cb   : > { %v761_v57 = vmax.f32 %v753_v48, %v757_v51  ;;  %v926_v59 = vpop.permute.xlu1 %925  ;;  %613 = vmax.xlane.f32.xlu0 %v612_v56  ;;  %v3451_v51 = vrot.slane %v3270_v47, %v1292_v35 }
 0x1cc   : > { %v593_v1 = vmul.f32 0.2, %v589_v55  ;;  %v938_v10 = vadd.f32 %v3420_v49, %v926_v59 }
 0x1cd   : > { %v3439_v22 = vadd.f32 %v3414_v43, %v761_v57 }
 0x1ce   : > { %v597_v24 = vmax.f32 %v589_v55, %v593_v1  ;;  %v942_v29 = vmul.f32 0.2, %v938_v10  ;;  %v733_v33 = vpop.permute.xlu0 %732  ;;  %v1471_v1 = vsub.s32 5, %v3388_v26 }
 0x1cf   : > { %v773_v37 = vsel %vm605_vm2, %v3439_v22, -inf }
 0x1d0   : > { %v946_v39 = vmax.f32 %v938_v10, %v942_v29  ;;  %v1105_v41 = vpop.permute.xlu1 %1104  ;;  %774 = vmax.xlane.f32.xlu0 %v773_v37  ;;  %v3445_v45 = vadd.f32 %v3433_v11, %v597_v24  ;;  %v1650_v37 = vsub.s32 6, %v3388_v26 }
 0x1d1   : > { %v1117_v46 = vadd.f32 %v3436_v17, %v1105_v41 }
 0x1d2   : > { %v606_v48 = vsel %vm605_vm2, %v3445_v45, -inf  ;;  %v3454_v52 = vadd.f32 %v3414_v43, %v946_v39  ;;  %v3465_v39 = vrot.slane %v3270_v47, %v1471_v1 }
 0x1d3   : > { %v1121_v53 = vmul.f32 0.2, %v1117_v46  ;;  %v1097_v55 = vpop.permute.xlu0 %1096  ;;  %607 = vmax.xlane.f32.xlu1 %v606_v48 }
 0x1d4   : > { %v958_v56 = vsel %vm605_vm2, %v3454_v52, -inf  ;;  %v1115_v6 = vadd.f32 %v3436_v17, %v1097_v55 }
 0x1d5   : > { %v1125_v57 = vmax.f32 %v1117_v46, %v1121_v53  ;;  %v1284_v59 = vpop.permute.xlu1 %1283  ;;  %959 = vmax.xlane.f32.xlu0 %v958_v56  ;;  %v3471_v56 = vrot.slane %v3270_v47, %v1650_v37 }
 0x1d6   : > { %v1296_v10 = vadd.f32 %v3451_v51, %v1284_v59 }
 0x1d7   : > { %v3461_v24 = vadd.f32 %v3414_v43, %v1125_v57 }
 0x1d8   : > { %v1300_v29 = vmul.f32 0.2, %v1296_v10  ;;  %v1455_v35 = vpop.permute.xlu0 %1454 }
 0x1d9   : > { %v1137_v41 = vsel %vm605_vm2, %v3461_v24, -inf }
 0x1da   : > { %v1304_v46 = vmax.f32 %v1296_v10, %v1300_v29  ;;  %v1463_v48 = vpop.permute.xlu1 %1462  ;;  %1138 = vmax.xlane.f32.xlu0 %v1137_v41  ;;  %v751_v29 = vadd.f32 %v3410_v38, %v733_v33 }
 0x1db   : > { %v1475_v53 = vadd.f32 %v3465_v39, %v1463_v48  ;;  %v3485_v48 = vrot.slane %v3270_v47, %v1829_v15 }
 0x1dc   : > { %v3474_v57 = vadd.f32 %v3414_v43, %v1304_v46  ;;  %v755_v26 = vmul.f32 0.2, %v751_v29 }
 0x1dd   : > { %v1479_v59 = vmul.f32 0.2, %v1475_v53  ;;  %v1813_v23 = vpop.permute.xlu0 %1812 }
 0x1de   : > { %v1316_v1 = vsel %vm605_vm2, %v3474_v57, -inf  ;;  %v759_v15 = vmax.f32 %v751_v29, %v755_v26  ;;  %v1831_v30 = vadd.f32 %v3485_v48, %v1813_v23 }
 0x1df   : > { %v1483_v62 = vmax.f32 %v1475_v53, %v1479_v59  ;;  %v1642_v8 = vpop.permute.xlu1 %1641  ;;  %1317 = vmax.xlane.f32.xlu0 %v1316_v1 }
 0x1e0   : > { %v1654_v10 = vadd.f32 %v3471_v56, %v1642_v8  ;;  %v3505_v55 = vadd.f32 %v3433_v11, %v759_v15 }
 0x1e1   : > { %v3482_v37 = vadd.f32 %v3414_v43, %v1483_v62 }
 0x1e2   : > { %v1658_v41 = vmul.f32 0.2, %v1654_v10  ;;  %v745_v46 = vpop.permute.xlu0 %744 }
 0x1e3   : > { %v1495_v0 = vsel %vm605_vm2, %v3482_v37, -inf  ;;  %v754_v15 = vadd.f32 %v3410_v38, %v745_v46 }
 0x1e4   : > { %v1662_v53 = vmax.f32 %v1654_v10, %v1658_v41  ;;  %v1821_v59 = vpop.permute.xlu1 %1820  ;;  %1496 = vmax.xlane.f32.xlu0 %v1495_v0  ;;  %v1119_v41 = vmul.f32 0.2, %v1115_v6 }
 0x1e5   : > { %v1833_v1 = vadd.f32 %v3485_v48, %v1821_v59 }
 0x1e6   : > { %v3491_v8 = vadd.f32 %v3414_v43, %v1662_v53 }
 0x1e7   : > { %v1837_v33 = vmul.f32 0.2, %v1833_v1  ;;  %v1109_v62 = vpop.permute.xlu0 %1108 }
 0x1e8   : > { %v1674_v47 = vsel %vm605_vm2, %v3491_v8, -inf  ;;  %v1118_v23 = vadd.f32 %v3436_v17, %v1109_v62 }
 0x1e9   : > { %v1841_v20 = vmax.f32 %v1833_v1, %v1837_v33  ;;  %v918_v44 = vpop.permute.xlu1 %917  ;;  %1675 = vmax.xlane.f32.xlu0 %v1674_v47  ;;  %v1123_v1 = vmax.f32 %v1115_v6, %v1119_v41  ;;  %v767_v33 = vsel %vm605_vm2, %v3505_v55, -inf }
 0x1ea   : > { %v936_v10 = vadd.f32 %v3420_v49, %v918_v44  ;;  %v1473_v44 = vadd.f32 %v3465_v39, %v1455_v35 }
 0x1eb   : > { %v3498_v0 = vadd.f32 %v3414_v43, %v1841_v20 }
 0x1ec   : > { %v940_v59 = vmul.f32 0.2, %v936_v10  ;;  %v3500_v53 = vpop.permute.xlu0 %1466 }
 0x1ed   : > { %v1853_v28 = vsel %vm605_vm2, %v3498_v0, -inf }
 0x1ee   : > { %v944_v14 = vmax.f32 %v936_v10, %v940_v59  ;;  %v1276_v29 = vpop.permute.xlu1 %1275  ;;  %1854 = vmax.xlane.f32.xlu0 %v1853_v28  ;;  %v3518_v28 = vadd.f32 %v3433_v11, %v1123_v1  ;;  %v1477_v59 = vmul.f32 0.2, %v1473_v44 }
 0x1ef   : > { %v1294_v26 = vadd.f32 %v3451_v51, %v1276_v29 }
 0x1f0   : > { %v3514_v47 = vadd.f32 %v3433_v11, %v944_v14  ;;  %v758_v14 = vmul.f32 0.2, %v754_v15  ;;  %v1131_v46 = vsel %vm605_vm2, %v3518_v28, -inf }
 0x1f1   : > { %v1298_v20 = vmul.f32 0.2, %v1294_v26  ;;  %v3509_v43 = vpop.permute.xlu0 %1824 }
 0x1f2   : > { %768 = vmax.xlane.f32.xlu0 %v767_v33  ;;  %v952_v41 = vsel %vm605_vm2, %v3514_v47, -inf  ;;  %v1481_v33 = vmax.f32 %v1473_v44, %v1477_v59 }
 0x1f3   : > { %v1634_v10 = vpop.permute.xlu1 %1633  ;;  %v1302_v6 = vmax.f32 %v1294_v26, %v1298_v20  ;;  %v1835_v20 = vmul.f32 0.2, %v1831_v30 }
 0x1f4   : > { %v1652_v35 = vadd.f32 %v3471_v56, %v1634_v10  ;;  %v762_v10 = vmax.f32 %v754_v15, %v758_v14 }
 0x1f5   : > { %v3528_v26 = vadd.f32 %v3433_v11, %v1302_v6 }
 0x1f6   : > { %v573_v29 = vpop.permute.xlu0 %572  ;;  %953 = vmax.xlane.f32.xlu0 %v952_v41  ;;  %v1656_v9 = vmul.f32 0.2, %v1652_v35  ;;  %v3531_v41 = vunpack.c.h.bf16 %v3406_v36  ;;  %v1839_v36 = vmax.f32 %v1831_v30, %v1835_v20 }
 0x1f7   : > { %v590_v58 = vadd.f32 %v3398_v31, %v573_v29  ;;  %v1310_v6 = vsel %vm605_vm2, %v3528_v26, -inf }
 0x1f8   : > { %v583_v21 = vpop.permute.xlu1 %582  ;;  %v1660_v59 = vmax.f32 %v1652_v35, %v1656_v9  ;;  %v1122_v9 = vmul.f32 0.2, %v1118_v23 }
 0x1f9   : > { %v592_v1 = vadd.f32 %v3398_v31, %v583_v21  ;;  %v3546_v31 = vadd.f32 %v3531_v41, %v762_v10 }
 0x1fa   : > { %1132 = vmax.xlane.f32.xlu0 %v1131_v46  ;;  %v3539_v46 = vadd.f32 %v3433_v11, %v1481_v33  ;;  %v3557_v30 = vadd.f32 %v3433_v11, %v1660_v59 }
 0x1fb   : > { %v596_v60 = vmul.f32 0.2, %v592_v1  ;;  %v922_v19 = vpop.permute.xlu0 %921  ;;  %v776_v59 = vsel %vm605_vm2, %v3546_v31, -inf }
 0x1fc   : > { %v937_v44 = vadd.f32 %v3420_v49, %v922_v19  ;;  %v594_v19 = vmul.f32 0.2, %v590_v58 }
 0x1fd   : > { %v600_v4 = vmax.f32 %v592_v1, %v596_v60  ;;  %v930_v21 = vpop.permute.xlu1 %929  ;;  %v3549_v60 = vunpack.c.h.bf16 %v3426_v54 }
 0x1fe   : > { %v941_v15 = vmul.f32 0.2, %v937_v44  ;;  %v939_v14 = vadd.f32 %v3420_v49, %v930_v21  ;;  %1311 = vmax.xlane.f32.xlu0 %v1310_v6  ;;  %v1489_v49 = vsel %vm605_vm2, %v3539_v46, -inf  ;;  %v3564_v6 = vadd.f32 %v3433_v11, %v1839_v36 }
 0x1ff   : > { %v3543_v62 = vadd.f32 %v3531_v41, %v600_v4  ;;  %v598_v5 = vmax.f32 %v590_v58, %v594_v19 }
 0x200   : > { %v945_v35 = vmax.f32 %v937_v44, %v941_v15  ;;  %v943_v29 = vmul.f32 0.2, %v939_v14  ;;  %v1280_v33 = vpop.permute.xlu0 %1279  ;;  %v1126_v15 = vmax.f32 %v1118_v23, %v1122_v9  ;;  %v1847_v36 = vsel %vm605_vm2, %v3564_v6, -inf }
 0x201   : > { %v1295_v1 = vadd.f32 %v3451_v51, %v1280_v33  ;;  %v615_v4 = vsel %vm605_vm2, %v3543_v62, -inf  ;;  %v1476_v33 = vadd.f32 %v3465_v39, %v3500_v53 }
 0x202   : > { %v947_v20 = vmax.f32 %v939_v14, %v943_v29  ;;  %v1288_v10 = vpop.permute.xlu1 %1287  ;;  %1490 = vmax.xlane.f32.xlu0 %v1489_v49  ;;  %616 = vmax.xlane.f32.xlu1 %v615_v4  ;;  %v3560_v54 = vadd.f32 %v3549_v60, %v945_v35  ;;  %v1668_v35 = vsel %vm605_vm2, %v3557_v30, -inf  ;;  %v3582_v9 = vadd.f32 %v3531_v41, %v1126_v15 }
 0x203   : > { %v1299_v44 = vmul.f32 0.2, %v1295_v1  ;;  %v1297_v21 = vadd.f32 %v3451_v51, %v1288_v10  ;;  %v1480_v58 = vmul.f32 0.2, %v1476_v33  ;;  %v3588_v10 = vadd.f32 %v3549_v60, %v598_v5 }
 0x204   : > { %v3573_v4 = vadd.f32 %v3531_v41, %v947_v20 }
 0x205   : > { %v1303_v14 = vmax.f32 %v1295_v1, %v1299_v44  ;;  %v1301_v29 = vmul.f32 0.2, %v1297_v21  ;;  %v1638_v49 = vpop.permute.xlu0 %1637 }
 0x206   : > { %v1653_v11 = vadd.f32 %v3471_v56, %v1638_v49  ;;  %1669 = vmax.xlane.f32.xlu0 %v1668_v35  ;;  %777 = vmax.xlane.f32.xlu1 %v776_v59  ;;  %v961_v20 = vsel %vm605_vm2, %v3573_v4, -inf  ;;  %v1484_v59 = vmax.f32 %v1476_v33, %v1480_v58  ;;  %v1140_v49 = vsel %vm605_vm2, %v3582_v9, -inf }
 0x207   : > { %v1646_v51 = vpop.permute.xlu1 %1645  ;;  %v3577_v53 = vadd.f32 %v3549_v60, %v1303_v14  ;;  %v1305_v19 = vmax.f32 %v1297_v21, %v1301_v29  ;;  %v609_v29 = vsel %vm605_vm2, %v3588_v10, -inf }
 0x208   : > { %v1657_v23 = vmul.f32 0.2, %v1653_v11  ;;  %v1655_v1 = vadd.f32 %v3471_v56, %v1646_v51  ;;  %v1834_v56 = vadd.f32 %v3485_v48, %v3509_v43  ;;  %v3603_v33 = vadd.f32 %v3531_v41, %v1484_v59 }
 0x209   : > { %v3600_v5 = vadd.f32 %v3531_v41, %v1305_v19 }
 0x20a   : > { %v1661_v44 = vmax.f32 %v1653_v11, %v1657_v23  ;;  %1848 = vmax.xlane.f32.xlu0 %v1847_v36  ;;  %962 = vmax.xlane.f32.xlu1 %v961_v20  ;;  %v1659_v21 = vmul.f32 0.2, %v1655_v1  ;;  %v1838_v35 = vmul.f32 0.2, %v1834_v56  ;;  %v1498_v19 = vsel %vm605_vm2, %v3603_v33, -inf }
 0x20b   : > { %v1319_v43 = vsel %vm605_vm2, %v3600_v5, -inf }
 0x20c   : > { %v737_v14 = vpop.permute.xlu1 %736  ;;  %v3593_v15 = vadd.f32 %v3549_v60, %v1661_v44  ;;  %v1663_v11 = vmax.f32 %v1655_v1, %v1659_v21  ;;  %v1842_v23 = vmax.f32 %v1834_v56, %v1838_v35 }
 0x20d   : > { %v752_v51 = vadd.f32 %v3410_v38, %v737_v14 }
 0x20e   : > { %610 = vmax.xlane.f32.xlu0 %v609_v29  ;;  %1141 = vmax.xlane.f32.xlu1 %v1140_v49  ;;  %v3611_v20 = vadd.f32 %v3531_v41, %v1663_v11  ;;  %v3617_v14 = vadd.f32 %v3531_v41, %v1842_v23 }
 0x20f   : > { %v756_v36 = vmul.f32 0.2, %v752_v51 }
 0x210   : > { %v1677_v38 = vsel %vm605_vm2, %v3611_v20, -inf  ;;  %v1856_v35 = vsel %vm605_vm2, %v3617_v14, -inf }
 0x211   : > { %v1101_v58 = vpop.permute.xlu1 %1100  ;;  %v760_v1 = vmax.f32 %v752_v51, %v756_v36 }
 0x212   : > { %1320 = vmax.xlane.f32.xlu1 %v1319_v43 }
 0x213   : > { %v3623_v11 = vadd.f32 %v3549_v60, %v760_v1 }
 0x215   : > { %v770_v41 = vsel %vm605_vm2, %v3623_v11, -inf }
 0x216   : > { %v1459_v44 = vpop.permute.xlu1 %1458  ;;  %1499 = vmax.xlane.f32.xlu1 %v1498_v19 }
 0x217   : > { %v1474_v59 = vadd.f32 %v3465_v39, %v1459_v44  ;;  %v955_v44 = vsel %vm605_vm2, %v3560_v54, -inf }
 0x219   : > { %v1478_v49 = vmul.f32 0.2, %v1474_v59 }
 0x21a   : > { %1678 = vmax.xlane.f32.xlu1 %v1677_v38 }
 0x21b   : > { %v1482_v56 = vmax.f32 %v1474_v59, %v1478_v49  ;;  %v1817_v21 = vpop.permute.xlu1 %1816 }
 0x21c   : > { %v1832_v29 = vadd.f32 %v3485_v48, %v1817_v21  ;;  %v1116_v48 = vadd.f32 %v3436_v17, %v1101_v58  ;;  %v1313_v58 = vsel %vm605_vm2, %v3577_v53, -inf }
 0x21d   : > { %v3626_v39 = vadd.f32 %v3549_v60, %v1482_v56 }
 0x21e   : > { %v1836_v51 = vmul.f32 0.2, %v1832_v29  ;;  %1857 = vmax.xlane.f32.xlu1 %v1856_v35  ;;  %v1120_v36 = vmul.f32 0.2, %v1116_v48 }
 0x220   : > { %v1840_v43 = vmax.f32 %v1832_v29, %v1836_v51  ;;  %v1124_v19 = vmax.f32 %v1116_v48, %v1120_v36  ;;  %v1492_v29 = vsel %vm605_vm2, %v3626_v39, -inf  ;;  %v1671_v51 = vsel %vm605_vm2, %v3593_v15, -inf }
 0x222   : > { %771 = vmax.xlane.f32.xlu1 %v770_v41  ;;  %v3631_v23 = vadd.f32 %v3549_v60, %v1840_v43  ;;  %v3641_v59 = vadd.f32 %v3549_v60, %v1124_v19 }
 0x224   : > { %1899 = vrot.lane.b32.xlu0 %v3215_v34, %s3051_s13  ;;  %v1134_v38 = vsel %vm605_vm2, %v3641_v59, -inf }
 0x233   : > { %1720 = vrot.lane.b32.xlu1 %v3215_v34, %s3053_s15 }
 0x257   : > { %956 = vmax.xlane.f32.xlu1 %v955_v44 }
 0x258   : > { %v614_v1 = vpop.xlane.xlu0 %613 }
 0x259   : > { %v620_v49 = vsub.f32 %v3423_v50, %v614_v1 }
 0x25b   : > { %v626_v56 = vmul.f32 1.442695, %v620_v49  ;;  %1135 = vmax.xlane.f32.xlu1 %v1134_v38 }
 0x25d   : > { %2788 = vpow2.f32 %v626_v56  ;;  %v775_v34 = vpop.xlane.xlu0 %774 }
 0x25e   : > { %v781_v17 = vsub.f32 %v3439_v22, %v775_v34 }
 0x25f   : > { %1314 = vmax.xlane.f32.xlu1 %v1313_v58 }
 0x260   : > { %v787_v21 = vmul.f32 1.442695, %v781_v17  ;;  %v608_v34 = vpop.xlane.xlu1 %607 }
 0x262   : > { %2790 = vpow2.f32 %v787_v21  ;;  %v960_v60 = vpop.xlane.xlu0 %959 }
 0x263   : > { %v966_v50 = vsub.f32 %v3454_v52, %v960_v60  ;;  %1493 = vmax.xlane.f32.xlu1 %v1492_v29  ;;  %v1850_v52 = vsel %vm605_vm2, %v3631_v23, -inf  ;;  %v618_v60 = vsub.f32 %v3445_v45, %v608_v34 }
 0x265   : > { %v972_v35 = vmul.f32 1.442695, %v966_v50 }
 0x267   : > { %v3654_v43 = vpop.eup %2788  ;;  %2792 = vpow2.f32 %v972_v35  ;;  %v1139_v22 = vpop.xlane.xlu0 %1138  ;;  %1672 = vmax.xlane.f32.xlu1 %v1671_v51  ;;  %v622_v51 = vmul.f32 1.442695, %v618_v60 }
 0x268   : > { %v1145_v41 = vsub.f32 %v3461_v24, %v1139_v22  ;;  %v636_v48 = vsel %vm605_vm2, %v3654_v43, 0.0 }
 0x269   : > { %637 = vadd.xlane.f32.xlu0 %v636_v48 }
 0x26a   : > { %v1151_v36 = vmul.f32 1.442695, %v1145_v41 }
 0x26b   : > { %1851 = vmax.xlane.f32.xlu1 %v1850_v52 }
 0x26c   : > { %v3661_v19 = vpop.eup %2790  ;;  %2794 = vpow2.f32 %v1151_v36  ;;  %v1318_v44 = vpop.xlane.xlu0 %1317 }
 0x26d   : > { %v1324_v1 = vsub.f32 %v3474_v57, %v1318_v44  ;;  %v797_v49 = vsel %vm605_vm2, %v3661_v19, 0.0 }
 0x26e   : > { %798 = vadd.xlane.f32.xlu0 %v797_v49 }
 0x26f   : > { %v1330_v24 = vmul.f32 1.442695, %v1324_v1 }
 0x271   : > { %v3666_v38 = vpop.eup %2792  ;;  %2796 = vpow2.f32 %v1330_v24  ;;  %v1497_v56 = vpop.xlane.xlu0 %1496 }
 0x272   : > { %v1503_v17 = vsub.f32 %v3482_v37, %v1497_v56  ;;  %v982_v58 = vsel %vm605_vm2, %v3666_v38, 0.0 }
 0x273   : > { %983 = vadd.xlane.f32.xlu0 %v982_v58 }
 0x274   : > { %v1509_v21 = vmul.f32 1.442695, %v1503_v17 }
 0x276   : > { %v3672_v57 = vpop.eup %2794  ;;  %2798 = vpow2.f32 %v1509_v21  ;;  %v1676_v29 = vpop.xlane.xlu0 %1675 }
 0x277   : > { %v1682_v50 = vsub.f32 %v3491_v8, %v1676_v29  ;;  %v1161_v35 = vsel %vm605_vm2, %v3672_v57, 0.0 }
 0x278   : > { %1162 = vadd.xlane.f32.xlu0 %v1161_v35 }
 0x279   : > { %v1688_v22 = vmul.f32 1.442695, %v1682_v50 }
 0x27b   : > { %v3677_v37 = vpop.eup %2796  ;;  %2800 = vpow2.f32 %v1688_v22  ;;  %v1855_v41 = vpop.xlane.xlu0 %1854 }
 0x27c   : > { %v1861_v48 = vsub.f32 %v3498_v0, %v1855_v41  ;;  %v1340_v45 = vsel %vm605_vm2, %v3677_v37, 0.0  ;;  %2802 = vpow2.f32 %v622_v51 }
 0x27d   : > { %1341 = vadd.xlane.f32.xlu1 %v1340_v45 }
 0x27e   : > { %v1867_v36 = vmul.f32 1.442695, %v1861_v48 }
 0x27f   : > { %v769_v52 = vpop.xlane.xlu0 %768 }
 0x280   : > { %v3682_v8 = vpop.eup %2798  ;;  %2804 = vpow2.f32 %v1867_v36  ;;  %v779_v44 = vsub.f32 %v3505_v55, %v769_v52 }
 0x281   : > { %v1519_v1 = vsel %vm605_vm2, %v3682_v8, 0.0 }
 0x282   : > { %v783_v49 = vmul.f32 1.442695, %v779_v44  ;;  %1520 = vadd.xlane.f32.xlu0 %v1519_v1 }
 0x283   : > { %v954_v24 = vpop.xlane.xlu0 %953 }
 0x284   : > { %2806 = vpow2.f32 %v783_v49  ;;  %v964_v0 = vsub.f32 %v3514_v47, %v954_v24 }
 0x285   : > { %v3688_v56 = vpop.eup %2800 }
 0x286   : > { %v968_v34 = vmul.f32 1.442695, %v964_v0  ;;  %v1698_v17 = vsel %vm605_vm2, %v3688_v56, 0.0  ;;  %v3692_v58 = vpop.eup %2802 }
 0x287   : > { %1699 = vadd.xlane.f32.xlu0 %v1698_v17  ;;  %v1133_v21 = vpop.xlane.xlu0 %1132  ;;  %v630_v50 = vsel %vm605_vm2, %v3692_v58, 0.0 }
 0x288   : > { %2808 = vpow2.f32 %v968_v34  ;;  %v1143_v55 = vsub.f32 %v3518_v28, %v1133_v21 }
 0x28a   : > { %v3695_v60 = vpop.eup %2804  ;;  %v1147_v29 = vmul.f32 1.442695, %v1143_v55 }
 0x28b   : > { %v1312_v47 = vpop.xlane.xlu0 %1311  ;;  %631 = vadd.xlane.f32.xlu0 %v630_v50  ;;  %v1877_v35 = vsel %vm605_vm2, %v3695_v60, 0.0 }
 0x28c   : > { %2810 = vpow2.f32 %v1147_v29  ;;  %v1322_v51 = vsub.f32 %v3528_v26, %v1312_v47  ;;  %1878 = vadd.xlane.f32.xlu1 %v1877_v35 }
 0x28e   : > { %v3702_v22 = vpop.eup %2806  ;;  %v1326_v41 = vmul.f32 1.442695, %v1322_v51 }
 0x28f   : > { %v1491_v48 = vpop.xlane.xlu0 %1490  ;;  %v617_v28 = vpop.xlane.xlu1 %616  ;;  %v791_v45 = vsel %vm605_vm2, %v3702_v22, 0.0 }
 0x290   : > { %2812 = vpow2.f32 %v1326_v41  ;;  %v1501_v36 = vsub.f32 %v3539_v46, %v1491_v48  ;;  %792 = vadd.xlane.f32.xlu0 %v791_v45  ;;  %v621_v1 = vsub.f32 %v3543_v62, %v617_v28 }
 0x292   : > { %v3707_v52 = vpop.eup %2808  ;;  %v1505_v44 = vmul.f32 1.442695, %v1501_v36  ;;  %v628_v46 = vmul.f32 1.442695, %v621_v1 }
 0x293   : > { %v1670_v49 = vpop.xlane.xlu0 %1669  ;;  %v778_v26 = vpop.xlane.xlu1 %777  ;;  %v976_v24 = vsel %vm605_vm2, %v3707_v52, 0.0 }
 0x294   : > { %2814 = vpow2.f32 %v1505_v44  ;;  %v1680_v0 = vsub.f32 %v3557_v30, %v1670_v49  ;;  %977 = vadd.xlane.f32.xlu0 %v976_v24  ;;  %v782_v34 = vsub.f32 %v3546_v31, %v778_v26 }
 0x296   : > { %v3714_v17 = vpop.eup %2810  ;;  %v1684_v21 = vmul.f32 1.442695, %v1680_v0  ;;  %v789_v35 = vmul.f32 1.442695, %v782_v34 }
 0x297   : > { %v1849_v55 = vpop.xlane.xlu0 %1848  ;;  %v963_v29 = vpop.xlane.xlu1 %962  ;;  %v1155_v62 = vsel %vm605_vm2, %v3714_v17, 0.0 }
 0x298   : > { %2816 = vpow2.f32 %v1684_v21  ;;  %v1859_v50 = vsub.f32 %v3564_v6, %v1849_v55  ;;  %v967_v47 = vsub.f32 %v3573_v4, %v963_v29  ;;  %1156 = vadd.xlane.f32.xlu1 %v1155_v62 }
 0x299   : > { %2818 = vpow2.f32 %v628_v46 }
 0x29a   : > { %v3720_v30 = vpop.eup %2812  ;;  %v1863_v31 = vmul.f32 1.442695, %v1859_v50  ;;  %v974_v51 = vmul.f32 1.442695, %v967_v47 }
 0x29b   : > { %v1142_v41 = vpop.xlane.xlu1 %1141  ;;  %v1334_v48 = vsel %vm605_vm2, %v3720_v30, 0.0 }
 0x29c   : > { %2820 = vpow2.f32 %v1863_v31  ;;  %v1146_v28 = vsub.f32 %v3582_v9, %v1142_v41  ;;  %1335 = vadd.xlane.f32.xlu1 %v1334_v48 }
 0x29d   : > { %2822 = vpow2.f32 %v789_v35 }
 0x29e   : > { %v3725_v45 = vpop.eup %2814  ;;  %2824 = vpow2.f32 %v974_v51  ;;  %v1153_v6 = vmul.f32 1.442695, %v1146_v28 }
 0x29f   : > { %v1321_v4 = vpop.xlane.xlu1 %1320  ;;  %v1513_v36 = vsel %vm605_vm2, %v3725_v45, 0.0 }
 0x2a0   : > { %v1325_v44 = vsub.f32 %v3600_v5, %v1321_v4  ;;  %1514 = vadd.xlane.f32.xlu1 %v1513_v36  ;;  %2826 = vpow2.f32 %v1153_v6  ;;  %v611_v5 = vpop.xlane.xlu0 %610 }
 0x2a2   : > { %v3730_v1 = vpop.eup %2816  ;;  %v1332_v49 = vmul.f32 1.442695, %v1325_v44 }
 0x2a3   : > { %4158 = vst [vmem:[#allocation23_spill] sm:$0xff] %v3730_v1  ;;  %v1500_v26 = vpop.xlane.xlu1 %1499  ;;  %v1692_v9 = vsel %vm605_vm2, %v3730_v1, 0.0  ;;  %v3734_v24 = vpop.eup %2818 }
 0x2a4   : > { %2828 = vpow2.f32 %v1332_v49  ;;  %v1504_v0 = vsub.f32 %v3603_v33, %v1500_v26  ;;  %1693 = vadd.xlane.f32.xlu1 %v1692_v9  ;;  %v639_v62 = vsel %vm605_vm2, %v3734_v24, 0.0  ;;  %v619_v33 = vsub.f32 %v3588_v10, %v611_v5 }
 0x2a6   : > { %v3737_v34 = vpop.eup %2820  ;;  %v1511_v46 = vmul.f32 1.442695, %v1504_v0  ;;  %v624_v6 = vmul.f32 1.442695, %v619_v33 }
 0x2a7   : > { %4159 = vst [vmem:[#allocation24_spill] sm:$0xff] %v3737_v34  ;;  %v3739_v21 = vpop.eup %2822  ;;  %v1679_v55 = vpop.xlane.xlu1 %1678  ;;  %v1871_v29 = vsel %vm605_vm2, %v3737_v34, 0.0 }
 0x2a8   : > { %v3745_v50 = vpop.eup %2824  ;;  %2830 = vpow2.f32 %v1511_v46  ;;  %v1683_v47 = vsub.f32 %v3611_v20, %v1679_v55  ;;  %1872 = vadd.xlane.f32.xlu0 %v1871_v29  ;;  %640 = vadd.xlane.f32.xlu1 %v639_v62  ;;  %v800_v51 = vsel %vm605_vm2, %v3739_v21, 0.0 }
 0x2a9   : > { %v985_v41 = vsel %vm605_vm2, %v3745_v50, 0.0 }
 0x2aa   : > { %v1690_v35 = vmul.f32 1.442695, %v1683_v47  ;;  %v3753_v48 = vpop.eup %2826 }
 0x2ab   : > { %v1858_v31 = vpop.xlane.xlu1 %1857  ;;  %v1164_v36 = vsel %vm605_vm2, %v3753_v48, 0.0 }
 0x2ac   : > { %2832 = vpow2.f32 %v1690_v35  ;;  %v1862_v28 = vsub.f32 %v3617_v14, %v1858_v31  ;;  %801 = vadd.xlane.f32.xlu1 %v800_v51  ;;  %986 = vadd.xlane.f32.xlu0 %v985_v41 }
 0x2ae   : > { %v3756_v20 = vpop.eup %2828  ;;  %v1869_v4 = vmul.f32 1.442695, %v1862_v28 }
 0x2af   : > { %v772_v10 = vpop.xlane.xlu1 %771  ;;  %v1343_v44 = vsel %vm605_vm2, %v3756_v20, 0.0 }
 0x2b0   : > { %2834 = vpow2.f32 %v1869_v4  ;;  %v780_v49 = vsub.f32 %v3623_v11, %v772_v10  ;;  %1165 = vadd.xlane.f32.xlu0 %v1164_v36  ;;  %1344 = vadd.xlane.f32.xlu1 %v1343_v44 }
 0x2b1   : > { %2836 = vpow2.f32 %v624_v6 }
 0x2b2   : > { %v3763_v26 = vpop.eup %2830  ;;  %v785_v14 = vmul.f32 1.442695, %v780_v49 }
 0x2b3   : > { %v1522_v9 = vsel %vm605_vm2, %v3763_v26, 0.0  ;;  %v3783_v33 = vpop.permute.xlu1 %1720 }
 0x2b4   : > { %1523 = vadd.xlane.f32.xlu1 %v1522_v9  ;;  %2838 = vpow2.f32 %v785_v14 }
 0x2b6   : > { %v3767_v0 = vpop.eup %2832 }
 0x2b7   : > { %v1701_v46 = vsel %vm605_vm2, %v3767_v0, 0.0 }
 0x2b8   : > { %1702 = vadd.xlane.f32.xlu1 %v1701_v46 }
 0x2ba   : > { %v3771_v5 = vpop.eup %2834 }
 0x2bb   : > { %v1880_v11 = vsel %vm605_vm2, %v3771_v5, 0.0  ;;  %v3775_v55 = vpop.eup %2836 }
 0x2bc   : > { %1881 = vadd.xlane.f32.xlu1 %v1880_v11  ;;  %v633_v29 = vsel %vm605_vm2, %v3775_v55, 0.0 }
 0x2be   : > { %v3779_v62 = vpop.eup %2838 }
 0x2bf   : > { %v794_v47 = vsel %vm605_vm2, %v3779_v62, 0.0 }
 0x2c0   : > { %634 = vadd.xlane.f32.xlu1 %v633_v29 }
 0x2c4   : > { %795 = vadd.xlane.f32.xlu1 %v794_v47 }
 0x2e4   : > { %v957_v35 = vpop.xlane.xlu1 %956 }
 0x2e5   : > { %v965_v31 = vsub.f32 %v3560_v54, %v957_v35 }
 0x2e7   : > { %v970_v51 = vmul.f32 1.442695, %v965_v31 }
 0x2e8   : > { %v1136_v41 = vpop.xlane.xlu1 %1135 }
 0x2e9   : > { %2840 = vpow2.f32 %v970_v51  ;;  %v1144_v28 = vsub.f32 %v3641_v59, %v1136_v41 }
 0x2eb   : > { %v1149_v6 = vmul.f32 1.442695, %v1144_v28 }
 0x2ec   : > { %v1315_v4 = vpop.xlane.xlu1 %1314 }
 0x2ed   : > { %2842 = vpow2.f32 %v1149_v6  ;;  %v1323_v10 = vsub.f32 %v3577_v53, %v1315_v4  ;;  %v3811_v6 = vpop.permute.xlu0 %1899 }
 0x2ef   : > { %v1328_v36 = vmul.f32 1.442695, %v1323_v10 }
 0x2f0   : > { %v1494_v44 = vpop.xlane.xlu1 %1493 }
 0x2f1   : > { %2844 = vpow2.f32 %v1328_v36  ;;  %v1502_v49 = vsub.f32 %v3626_v39, %v1494_v44 }
 0x2f3   : > { %v3789_v14 = vpop.eup %2840  ;;  %v1507_v9 = vmul.f32 1.442695, %v1502_v49 }
 0x2f4   : > { %v979_v54 = vsel %vm605_vm2, %v3789_v14, 0.0  ;;  %v1673_v47 = vpop.xlane.xlu1 %1672 }
 0x2f5   : > { %2846 = vpow2.f32 %v1507_v9  ;;  %980 = vadd.xlane.f32.xlu1 %v979_v54  ;;  %v1681_v31 = vsub.f32 %v3593_v15, %v1673_v47 }
 0x2f6   : > { %v638_v36 = vpop.xlane.xlu0 %637 }
 0x2f7   : > { %v3793_v46 = vpop.eup %2842  ;;  %v1686_v41 = vmul.f32 1.442695, %v1681_v31 }
 0x2f8   : > { %v1158_v59 = vsel %vm605_vm2, %v3793_v46, 0.0  ;;  %v1852_v35 = vpop.xlane.xlu1 %1851 }
 0x2f9   : > { %1159 = vadd.xlane.f32.xlu0 %v1158_v59  ;;  %v1860_v28 = vsub.f32 %v3631_v23, %v1852_v35  ;;  %2848 = vpow2.f32 %v1686_v41 }
 0x2fb   : > { %v3797_v53 = vpop.eup %2844  ;;  %v1865_v10 = vmul.f32 1.442695, %v1860_v28  ;;  %v799_v9 = vpop.xlane.xlu0 %798 }
 0x2fc   : > { %v1337_v11 = vsel %vm605_vm2, %v3797_v53, 0.0 }
 0x2fd   : > { %1338 = vadd.xlane.f32.xlu0 %v1337_v11  ;;  %2850 = vpow2.f32 %v1865_v10 }
 0x2ff   : > { %v3801_v39 = vpop.eup %2846 }
 0x300   : > { %v1516_v29 = vsel %vm605_vm2, %v3801_v39, 0.0  ;;  %v3821_v15 = vpop.xlane.xlu0 %983 }
 0x301   : > { %1517 = vadd.xlane.f32.xlu1 %v1516_v29 }
 0x303   : > { %v3819_v54 = vpop.eup %2848 }
 0x304   : > { %4160 = vst [vmem:[#allocation25_spill] sm:$0xff] %v3819_v54  ;;  %v1695_v23 = vsel %vm605_vm2, %v3819_v54, 0.0 }
 0x305   : > { %v3831_v35 = vpop.xlane.xlu0 %1162 }
 0x307   : > { %v3827_v11 = vpop.eup %2850 }
 0x308   : > { %4161 = vst [vmem:[#allocation26_spill] sm:$0xff] %v3827_v11  ;;  %v1874_v47 = vsel %vm605_vm2, %v3827_v11, 0.0 }
 0x30a   : > { %v1342_v51 = vpop.xlane.xlu1 %1341 }
 0x30b   : > { %2852 = vrcp.f32 %v1342_v51 }
 0x30f   : > { %v1521_v41 = vpop.xlane.xlu0 %1520 }
 0x312   : > { %1722 = vrot.lane.b32.xlu1 %v3225_v42, %s3053_s15 }
 0x313   : > { %1901 = vrot.lane.b32.xlu0 %v3225_v42, %s3051_s13 }
 0x314   : > { %v1700_v10 = vpop.xlane.xlu0 %1699 }
 0x318   : > { %v632_v1 = vpop.xlane.xlu0 %631 }
 0x319   : > { %v1879_v4 = vpop.xlane.xlu1 %1878 }
 0x325   : > { %v3813_v44 = vpop.xlane.xlu1 %1156 }
 0x329   : > { %v3815_v49 = vpop.xlane.xlu1 %1335 }
 0x32d   : > { %v3817_v42 = vpop.xlane.xlu1 %1514 }
 0x331   : > { %v3823_v59 = vpop.xlane.xlu1 %1693 }
 0x332   : > { %1696 = vadd.xlane.f32.xlu0 %v1695_v23  ;;  %v2853_v23 = vpop.eup %2852 }
 0x335   : > { %v641_v29 = vpop.xlane.xlu1 %640 }
 0x336   : > { %1875 = vadd.xlane.f32.xlu1 %v1874_v47 }
 0x339   : > { %v802_v31 = vpop.xlane.xlu1 %801 }
 0x33d   : > { %v1345_v28 = vpop.xlane.xlu1 %1344 }
 0x33e   : > { %2854 = vrcp.f32 %v1345_v28 }
 0x33f   : > { %2856 = vrcp.f32 %v1521_v41  ;;  %v3838_v41 = vmul.f32 %v2853_v23, %v3677_v37 }
 0x341   : > { %v1524_v34 = vpop.xlane.xlu1 %1523 }
 0x342   : > { %2858 = vrcp.f32 %v1524_v34 }
 0x343   : > { %2860 = vrcp.f32 %v1700_v10 }
 0x345   : > { %v1703_v54 = vpop.xlane.xlu1 %1702 }
 0x346   : > { %2862 = vrcp.f32 %v1703_v54 }
 0x347   : > { %1724 = vrot.lane.b32.xlu1 %v3223_v40, %s3053_s15  ;;  %2864 = vrcp.f32 %v1879_v4 }
 0x348   : > { %1903 = vrot.lane.b32.xlu0 %v3223_v40, %s3051_s13  ;;  %v2855_v47 = vpop.eup %2854  ;;  %v793_v40 = vpop.xlane.xlu0 %792 }
 0x349   : > { %v1882_v51 = vpop.xlane.xlu1 %1881  ;;  %v2857_v11 = vpop.eup %2856  ;;  %v3841_v34 = vmul.f32 %v2855_v47, %v3756_v20 }
 0x34a   : > { %2866 = vrcp.f32 %v1882_v51  ;;  %v3846_v4 = vmul.f32 %v2857_v11, %v3682_v8 }
 0x34b   : > { %2868 = vrcp.f32 %v641_v29 }
 0x34c   : > { %v2859_v54 = vpop.eup %2858  ;;  %2870 = vrcp.f32 %v632_v1 }
 0x34d   : > { %2872 = vrcp.f32 %v638_v36  ;;  %v3849_v10 = vmul.f32 %v2859_v54, %v3763_v26  ;;  %v635_v37 = vpop.xlane.xlu1 %634  ;;  %v2861_v23 = vpop.eup %2860 }
 0x34e   : > { %2874 = vrcp.f32 %v635_v37  ;;  %v3854_v1 = vmul.f32 %v2861_v23, %v3688_v56 }
 0x34f   : > { %2876 = vrcp.f32 %v802_v31 }
 0x350   : > { %v2863_v29 = vpop.eup %2862  ;;  %2878 = vrcp.f32 %v793_v40 }
 0x351   : > { %2880 = vrcp.f32 %v799_v9  ;;  %v3857_v8 = vmul.f32 %v2863_v29, %v3767_v0  ;;  %v796_v36 = vpop.xlane.xlu1 %795  ;;  %v2865_v11 = vpop.eup %2864 }
 0x352   : > { %2882 = vrcp.f32 %v796_v36  ;;  %v3862_v51 = vmul.f32 %v2865_v11, %v3695_v60 }
 0x354   : > { %v2867_v47 = vpop.eup %2866 }
 0x355   : > { %v2869_v31 = vpop.eup %2868  ;;  %v3865_v54 = vmul.f32 %v2867_v47, %v3771_v5 }
 0x356   : > { %v2871_v9 = vpop.eup %2870  ;;  %v649_v37 = vmul.f32 %v2869_v31, %v3734_v24 }
 0x357   : > { %v2873_v56 = vpop.eup %2872  ;;  %v646_v29 = vmul.f32 %v2871_v9, %v3692_v58 }
 0x358   : > { %v2875_v40 = vpop.eup %2874  ;;  %v648_v60 = vmul.f32 %v2873_v56, %v3654_v43 }
 0x359   : > { %v2877_v23 = vpop.eup %2876  ;;  %v647_v36 = vmul.f32 %v2875_v40, %v3775_v55 }
 0x35a   : > { %v2879_v26 = vpop.eup %2878  ;;  %v810_v47 = vmul.f32 %v2877_v23, %v3739_v21  ;;  %v651_v28 = vpack.c.bf16 %v649_v37, %v648_v60  ;;  %v4165_v23 = vld [vmem:[#allocation16_spill] sm:$0xff]  ;;  %v4167_v60 = vld [vmem:[#allocation13_spill] sm:$0xff] }
 0x35b   : > { %v2881_v11 = vpop.eup %2880  ;;  %v650_v20 = vpack.c.bf16 %v647_v36, %v646_v29  ;;  %v807_v0 = vmul.f32 %v2879_v26, %v3702_v22  ;;  %v4166_v29 = vld [vmem:[#allocation6_spill] sm:$0xff] }
 0x35c   : > { %v2883_v5 = vpop.eup %2882  ;;  %v809_v31 = vmul.f32 %v2881_v11, %v3661_v19  ;;  %v4168_v11 = vld [vmem:[#allocation18_spill] sm:$0xff] }
 0x35d   : > { %2496 = vmatprep.mubr.msk.bf16.mxu0 %vm605_vm2, %v650_v20  ;;  %v808_v24 = vmul.f32 %v2883_v5, %v3779_v62  ;;  %v4169_v5 = vld [vmem:[#allocation21_spill] sm:$0xff] }
 0x35e   : > { %2497 = vmatmul.mubr.msk.bf16.vlgmr.msra.gmra.mrb[16].mxu0 %vm605_vm2, %v651_v28  ;;  %v812_v43 = vpack.c.bf16 %v810_v47, %v809_v31  ;;  %v4172_v47 = vld [vmem:[#allocation22_spill] sm:$0xff]  ;;  %v4174_v31 = vld [vmem:[#allocation11_spill] sm:$0xff] }
 0x35f   : > { %2517 = vmatpush3.bf16.msra.mxu0 %v3336_v3  ;;  %v811_v58 = vpack.c.bf16 %v808_v24, %v807_v0  ;;  %v4163_v3 = vld [vmem:[#allocation9_spill] sm:$0xff] }
 0x360   : > { %2518 = vmatprep.subr.bf16.mxu0 %v3319_v61  ;;  %v4164_v0 = vld [vmem:[#allocation5_spill] sm:$0xff] }
 0x361   : > { %2512 = vmatprep.mubr.msk.bf16.mxu1 %vm605_vm2, %v811_v58  ;;  %v4173_v24 = vld [vmem:[#allocation17_spill] sm:$0xff]  ;;  %v4175_v58 = vpack.c.bf16 %v3841_v34, %v3838_v41  ;;  %v4179_v41 = vld [vmem:[#allocation15_spill] sm:$0xff] }
 0x362   : > { %2513 = vmatmul.mubr.msk.bf16.vlgmr.msra.gmra.mrb[4].mxu1 %vm605_vm2, %v812_v43  ;;  %v4176_v43 = vld [vmem:[#allocation8_spill] sm:$0xff]  ;;  %v4180_v34 = vld [vmem:[#allocation7_spill] sm:$0xff] }
 0x363   : > { %2519 = vmatpush3.bf16.msra.mxu0 %v3319_v61  ;;  %2533 = vmatpush3.bf16.msra.mxu1 %v3334_v2  ;;  %v978_v61 = vpop.xlane.xlu0 %977 }
 0x364   : > { %2520 = vmatprep.subr.bf16.mxu0 %v3362_v13  ;;  %2534 = vmatprep.subr.bf16.mxu1 %v3326_v63 }
 0x367   : > { %2521 = vmatpush3.bf16.msra.mxu0 %v3362_v13  ;;  %2535 = vmatpush3.bf16.msra.mxu1 %v3326_v63  ;;  %v4162_v63 = vld [vmem:[#allocation10_spill] sm:$0xff]  ;;  %v3903_v2 = vpop.xlane.xlu0 %1872 }
 0x368   : > { %2522 = vmatprep.subr.bf16.mxu0 %v3348_v7  ;;  %2536 = vmatprep.subr.bf16.mxu1 %v3371_v16 }
 0x36b   : > { %2523 = vmatpush3.bf16.msra.mxu0 %v3348_v7  ;;  %2537 = vmatpush3.bf16.msra.mxu1 %v3371_v16  ;;  %v987_v7 = vpop.xlane.xlu0 %986 }
 0x36c   : > { %2524 = vmatprep.subr.bf16.mxu0 %v3390_v27  ;;  %2538 = vmatprep.subr.bf16.mxu1 %v3360_v12  ;;  %2884 = vrcp.f32 %v987_v7 }
 0x36d   : > { %2886 = vrcp.f32 %v978_v61  ;;  %v4177_v61 = vld [vmem:[#allocation12_spill] sm:$0xff] }
 0x36e   : > { %2888 = vrcp.f32 %v3821_v15 }
 0x36f   : > { %2525 = vmatpush3.bf16.msra.mxu0 %v3390_v27  ;;  %2539 = vmatpush3.bf16.msra.mxu1 %v3360_v12  ;;  %v1166_v12 = vpop.xlane.xlu0 %1165 }
 0x370   : > { %2526 = vmatprep.subr.bf16.mxu0 %v3386_v25  ;;  %2540 = vmatprep.subr.bf16.mxu1 %v3403_v32 }
 0x373   : > { %2527 = vmatpush3.bf16.msra.mxu0 %v3386_v25  ;;  %2541 = vmatpush3.bf16.msra.mxu1 %v3403_v32 }
 0x374   : > { %2542 = vmatprep.subr.bf16.mxu1 %v3374_v18  ;;  %2548 = vmatprep.subr.bf16.mxu0 %v4162_v63 }
 0x377   : > { %2543 = vmatpush3.bf16.msra.mxu1 %v3374_v18  ;;  %v2885_v18 = vpop.eup %2884 }
 0x378   : > { %2564 = vmatprep.subr.bf16.mxu1 %v4163_v3  ;;  %v2887_v27 = vpop.eup %2886  ;;  %v995_v22 = vmul.f32 %v2885_v18, %v3745_v50 }
 0x379   : > { %v2889_v32 = vpop.eup %2888  ;;  %v992_v62 = vmul.f32 %v2887_v27, %v3707_v52  ;;  %v4183_v27 = vld [vmem:[#allocation25_spill] sm:$0xff] }
 0x382   : > { %v981_v13 = vpop.xlane.xlu1 %980 }
 0x383   : > { %2890 = vrcp.f32 %v981_v13 }
 0x384   : > { %2892 = vrcp.f32 %v1166_v12 }
 0x385   : > { %2894 = vrcp.f32 %v3813_v44 }
 0x386   : > { %2896 = vrcp.f32 %v3831_v35  ;;  %v1160_v16 = vpop.xlane.xlu0 %1159  ;;  %v994_v35 = vmul.f32 %v2889_v32, %v3666_v38 }
 0x387   : > { %2898 = vrcp.f32 %v1160_v16 }
 0x388   : > { %2900 = vrcp.f32 %v3815_v49  ;;  %v997_v9 = vpack.c.bf16 %v995_v22, %v994_v35  ;;  %v4187_v35 = vpack.c.bf16 %v3865_v54, %v3862_v51 }
 0x38a   : > { %v1339_v25 = vpop.xlane.xlu0 %1338 }
 0x38b   : > { %2902 = vrcp.f32 %v1339_v25  ;;  %v4182_v25 = vld [vmem:[#allocation23_spill] sm:$0xff] }
 0x38c   : > { %2904 = vrcp.f32 %v3817_v42 }
 0x38d   : > { %v2891_v19 = vpop.eup %2890 }
 0x38e   : > { %v2893_v21 = vpop.eup %2892  ;;  %v1518_v55 = vpop.xlane.xlu1 %1517  ;;  %v993_v44 = vmul.f32 %v2891_v19, %v3789_v14 }
 0x38f   : > { %v2895_v15 = vpop.eup %2894  ;;  %2906 = vrcp.f32 %v1518_v55  ;;  %v1174_v26 = vmul.f32 %v2893_v21, %v3753_v48  ;;  %v4185_v55 = vld [vmem:[#allocation26_spill] sm:$0xff] }
 0x390   : > { %v2897_v49 = vpop.eup %2896  ;;  %v996_v28 = vpack.c.bf16 %v993_v44, %v992_v62  ;;  %v1171_v50 = vmul.f32 %v2895_v15, %v3714_v17  ;;  %2908 = vrcp.f32 %v3823_v59  ;;  %v4186_v44 = vpack.c.bf16 %v3857_v8, %v3854_v1 }
 0x391   : > { %v2899_v20 = vpop.eup %2898  ;;  %v1173_v52 = vmul.f32 %v2897_v49, %v3672_v57 }
 0x392   : > { %2528 = vmatprep.mubr.msk.bf16.mxu0 %vm605_vm2, %v996_v28  ;;  %v1172_v42 = vmul.f32 %v2899_v20, %v3793_v46  ;;  %v2901_v56 = vpop.eup %2900  ;;  %v1723_v7 = vpop.permute.xlu1 %1722 }
 0x393   : > { %2529 = vmatmul.mubr.msk.bf16.vlgmr.msra.gmra.mrb[20].mxu0 %vm605_vm2, %v997_v9  ;;  %v1176_v40 = vpack.c.bf16 %v1174_v26, %v1173_v52  ;;  %v1350_v48 = vmul.f32 %v2901_v56, %v3720_v30 }
 0x394   : > { %2549 = vmatpush3.bf16.msra.mxu0 %v4162_v63  ;;  %v1175_v38 = vpack.c.bf16 %v1172_v42, %v1171_v50  ;;  %v4178_v63 = vpack.c.bf16 %v3849_v10, %v3846_v4  ;;  %v1902_v4 = vpop.permute.xlu0 %1901 }
 0x395   : > { %v2903_v14 = vpop.eup %2902  ;;  %2550 = vmatprep.subr.bf16.mxu0 %v4164_v0 }
 0x396   : > { %2544 = vmatprep.mubr.msk.bf16.mxu1 %vm605_vm2, %v1175_v38  ;;  %v1351_v17 = vmul.f32 %v2903_v14, %v3797_v53  ;;  %v2905_v37 = vpop.eup %2904 }
 0x397   : > { %2545 = vmatmul.mubr.msk.bf16.vlgmr.msra.gmra.mrb[8].mxu1 %vm605_vm2, %v1176_v40  ;;  %v1529_v36 = vmul.f32 %v2905_v37, %v3725_v45  ;;  %v4170_v45 = vld [vmem:[#allocation14_spill] sm:$0xff] }
 0x398   : > { %2551 = vmatpush3.bf16.msra.mxu0 %v4164_v0  ;;  %2565 = vmatpush3.bf16.msra.mxu1 %v4163_v3  ;;  %v1354_v57 = vpack.c.bf16 %v1351_v17, %v1350_v48  ;;  %v4181_v3 = vld [vmem:[#allocation19_spill] sm:$0xff] }
 0x399   : > { %v2907_v46 = vpop.eup %2906  ;;  %2552 = vmatprep.subr.bf16.mxu0 %v4165_v23  ;;  %2566 = vmatprep.subr.bf16.mxu1 %v4166_v29 }
 0x39a   : > { %2560 = vmatprep.mubr.msk.bf16.mxu0 %vm605_vm2, %v1354_v57  ;;  %v1530_v30 = vmul.f32 %v2907_v46, %v3801_v39  ;;  %v4171_v39 = vld [vmem:[#allocation20_spill] sm:$0xff]  ;;  %v2909_v16 = vpop.eup %2908 }
 0x39c   : > { %2553 = vmatpush3.bf16.msra.mxu0 %v4165_v23  ;;  %2567 = vmatpush3.bf16.msra.mxu1 %v4166_v29  ;;  %v1533_v53 = vpack.c.bf16 %v1530_v30, %v1529_v36 }
 0x39d   : > { %2554 = vmatprep.subr.bf16.mxu0 %v4167_v60  ;;  %2568 = vmatprep.subr.bf16.mxu1 %v4168_v11 }
 0x39e   : > { %2576 = vmatprep.mubr.msk.bf16.mxu1 %vm605_vm2, %v1533_v53 }
 0x3a0   : > { %2555 = vmatpush3.bf16.msra.mxu0 %v4167_v60  ;;  %2569 = vmatpush3.bf16.msra.mxu1 %v4168_v11 }
 0x3a1   : > { %2556 = vmatprep.subr.bf16.mxu0 %v4169_v5  ;;  %2570 = vmatprep.subr.bf16.mxu1 %v4170_v45 }
 0x3a4   : > { %2557 = vmatpush3.bf16.msra.mxu0 %v4169_v5  ;;  %2571 = vmatpush3.bf16.msra.mxu1 %v4170_v45 }
 0x3a5   : > { %2558 = vmatprep.subr.bf16.mxu0 %v4171_v39  ;;  %2572 = vmatprep.subr.bf16.mxu1 %v4172_v47 }
 0x3a8   : > { %2559 = vmatpush3.bf16.msra.mxu0 %v4171_v39  ;;  %2573 = vmatpush3.bf16.msra.mxu1 %v4172_v47 }
 0x3a9   : > { %2574 = vmatprep.subr.bf16.mxu1 %v4173_v24  ;;  %2580 = vmatprep.subr.bf16.mxu0 %v4174_v31 }
 0x3ab   : > { %2561 = vmatmul.mubr.msk.bf16.vlgmr.msra.gmra.mrb[24].mxu0 %vm605_vm2, %v4175_v58 }
 0x3ac   : > { %2575 = vmatpush3.bf16.msra.mxu1 %v4173_v24  ;;  %2581 = vmatpush3.bf16.msra.mxu0 %v4174_v31 }
 0x3ad   : > { %2582 = vmatprep.subr.bf16.mxu0 %v4176_v43  ;;  %2596 = vmatprep.subr.bf16.mxu1 %v4177_v61 }
 0x3af   : > { %2577 = vmatmul.mubr.msk.bf16.vlgmr.msra.gmra.mrb[12].mxu1 %vm605_vm2, %v4178_v63 }
 0x3b0   : > { %2583 = vmatpush3.bf16.msra.mxu0 %v4176_v43  ;;  %2597 = vmatpush3.bf16.msra.mxu1 %v4177_v61 }
 0x3b1   : > { %2584 = vmatprep.subr.bf16.mxu0 %v4179_v41  ;;  %2598 = vmatprep.subr.bf16.mxu1 %v4180_v34 }
 0x3b4   : > { %2585 = vmatpush3.bf16.msra.mxu0 %v4179_v41  ;;  %2599 = vmatpush3.bf16.msra.mxu1 %v4180_v34 }
 0x3b5   : > { %2586 = vmatprep.subr.bf16.mxu0 %v3783_v33  ;;  %2600 = vmatprep.subr.bf16.mxu1 %v4181_v3 }
 0x3b8   : > { %2587 = vmatpush3.bf16.msra.mxu0 %v3783_v33  ;;  %2601 = vmatpush3.bf16.msra.mxu1 %v4181_v3 }
 0x3b9   : > { %2588 = vmatprep.subr.bf16.mxu0 %v1723_v7  ;;  %2602 = vmatprep.subr.bf16.mxu1 %v3811_v6 }
 0x3bc   : > { %2589 = vmatpush3.bf16.msra.mxu0 %v1723_v7  ;;  %2603 = vmatpush3.bf16.msra.mxu1 %v3811_v6  ;;  %v1708_v6 = vmul.f32 %v2909_v16, %v4182_v25 }
 0x3bd   : > { %2604 = vmatprep.subr.bf16.mxu1 %v1902_v4 }
 0x3bf   : > { %v1697_v10 = vpop.xlane.xlu0 %1696 }
 0x3c0   : > { %2910 = vrcp.f32 %v1697_v10  ;;  %2605 = vmatpush3.bf16.msra.mxu1 %v1902_v4 }
 0x3c1   : > { %2912 = vrcp.f32 %v3903_v2  ;;  %v4184_v2 = vld [vmem:[#allocation24_spill] sm:$0xff] }
 0x3c3   : > { %v1904_v12 = vpop.permute.xlu0 %1903  ;;  %v1876_v13 = vpop.xlane.xlu1 %1875 }
 0x3c4   : > { %2914 = vrcp.f32 %v1876_v13  ;;  %2606 = vmatprep.subr.bf16.mxu1 %v1904_v12 }
 0x3c5   : > { %2607 = vmatpush3.bf16.msra.mxu1 %v1904_v12 }
 0x3c7   : > { %v1725_v33 = vpop.permute.xlu1 %1724 }
 0x3c8   : > { %2590 = vmatprep.subr.bf16.mxu0 %v1725_v33 }
 0x3c9   : > { %2591 = vmatpush3.bf16.msra.mxu0 %v1725_v33 }
 0x3ca   : > { %v2911_v18 = vpop.eup %2910 }
 0x3cb   : > { %v1709_v32 = vmul.f32 %v2911_v18, %v4183_v27  ;;  %v2913_v59 = vpop.eup %2912 }
 0x3cc   : > { %v1887_v21 = vmul.f32 %v2913_v59, %v4184_v2 }
 0x3cd   : > { %v1712_v19 = vpack.c.bf16 %v1709_v32, %v1708_v6 }
 0x3ce   : > { %v2915_v22 = vpop.eup %2914 }
 0x3cf   : > { %2592 = vmatprep.mubr.msk.bf16.mxu0 %vm605_vm2, %v1712_v19  ;;  %v1888_v62 = vmul.f32 %v2915_v22, %v4185_v55 }
 0x3d0   : > { %2593 = vmatmul.mubr.msk.bf16.vlgmr.msra.gmra.mrb[28].mxu0 %vm605_vm2, %v4186_v44 }
 0x3d1   : > { %v1891_v15 = vpack.c.bf16 %v1888_v62, %v1887_v21 }
 0x3d3   : > { %2608 = vmatprep.mubr.msk.bf16.mxu1 %vm605_vm2, %v1891_v15 }
 0x3d4   : > { %2609 = vmatmul.mubr.msk.bf16.vlgmr.msra.gmra.mrb[16].mxu1 %vm605_vm2, %v4187_v35 }
 0x431   : > { %v3992_v49 = vpop.f32.mrb[16].mxu0 }
 0x432   : > { %v3994_v28 = vpop.f32.mrb[17].mxu0 }
 0x433   : > { %v3996_v20 = vpop.f32.mrb[18].mxu0 }
 0x434   : > { %v3998_v26 = vpop.f32.mrb[19].mxu0 }
 0x435   : > { %v2514_v9 = vpop.f32.mrb[4].mxu1 }
 0x436   : > { %v898_v1 = vmin.f32 %v2514_v9, 0.0  ;;  %v877_v8 = vpop.f32.mrb[5].mxu1  ;;  %vm894_vm3 = vcmp.gt.f32.partialorder %v2514_v9, 0.0 }
 0x437   : > { %v896_v50 = vmin.f32 %v877_v8, 0.0  ;;  %v2515_v42 = vpop.f32.mrb[6].mxu1  ;;  %vm892_vm5 = vcmp.gt.f32.partialorder %v877_v8, 0.0 }
 0x438   : > { %v904_v56 = vmul.f32 1.442695, %v898_v1  ;;  %v899_v52 = vmin.f32 %v2515_v42, 0.0  ;;  %v880_v38 = vpop.f32.mrb[7].mxu1  ;;  %vm895_vm4 = vcmp.gt.f32.partialorder %v2515_v42, 0.0 }
 0x439   : > { %v900_v14 = vmul.f32 1.442695, %v896_v50  ;;  %v897_v51 = vmin.f32 %v880_v38, 0.0  ;;  %vm893_vm6 = vcmp.gt.f32.partialorder %v880_v38, 0.0 }
 0x43a   : > { %2916 = vpow2.f32 %v904_v56  ;;  %v906_v54 = vmul.f32 1.442695, %v899_v52 }
 0x43b   : > { %2918 = vpow2.f32 %v900_v14  ;;  %v902_v0 = vmul.f32 1.442695, %v897_v51 }
 0x43c   : > { %2920 = vpow2.f32 %v906_v54 }
 0x43d   : > { %2922 = vpow2.f32 %v902_v0 }
 0x444   : > { %v2917_v40 = vpop.eup %2916 }
 0x445   : > { %v2919_v48 = vpop.eup %2918  ;;  %v2277_v17 = vadd.f32 -1.0, %v2917_v40 }
 0x446   : > { %v2921_v37 = vpop.eup %2920  ;;  %v2275_v57 = vadd.f32 -1.0, %v2919_v48 }
 0x447   : > { %v2923_v46 = vpop.eup %2922  ;;  %v2278_v23 = vadd.f32 -1.0, %v2921_v37  ;;  %v914_v36 = vsel %vm894_vm3, %v2514_v9, %v2277_v17 }
 0x448   : > { %v2276_v29 = vadd.f32 -1.0, %v2923_v46  ;;  %v912_v53 = vsel %vm892_vm5, %v877_v8, %v2275_v57 }
 0x449   : > { %v915_v30 = vsel %vm895_vm4, %v2515_v42, %v2278_v23 }
 0x44a   : > { %v2701_v60 = vpack.i.bf16 %v915_v30, %v914_v36  ;;  %v913_v11 = vsel %vm893_vm6, %v880_v38, %v2276_v29 }
 0x44b   : > { %v2706_v5 = vpack.i.bf16 %v913_v11, %v912_v53 }
 0x44c   : > { %2702 = vrot.lane.b32.xlu0 %v2701_v60, %s3051_s13 }
 0x44d   : > { %2707 = vrot.lane.b32.xlu1 %v2706_v5, %s3051_s13  ;;  %s4067_s13 = scalar_lea.sflag [#allocation3], %s216_s30 }
 0x466   : > { %v2530_v45 = vpop.f32.mrb[20].mxu0 }
 0x467   : > { %v1077_v39 = vmin.f32 %v2530_v45, 0.0  ;;  %v1056_v47 = vpop.f32.mrb[21].mxu0  ;;  %vm1073_vm7 = vcmp.gt.f32.partialorder %v2530_v45, 0.0 }
 0x468   : > { %v1075_v24 = vmin.f32 %v1056_v47, 0.0  ;;  %v2531_v31 = vpop.f32.mrb[22].mxu0  ;;  %vm1071_vm8 = vcmp.gt.f32.partialorder %v1056_v47, 0.0 }
 0x469   : > { %v1083_v58 = vmul.f32 1.442695, %v1077_v39  ;;  %v1078_v43 = vmin.f32 %v2531_v31, 0.0  ;;  %v1059_v61 = vpop.f32.mrb[23].mxu0  ;;  %vm1074_vm9 = vcmp.gt.f32.partialorder %v2531_v31, 0.0 }
 0x46a   : > { %v1079_v63 = vmul.f32 1.442695, %v1075_v24  ;;  %v1076_v41 = vmin.f32 %v1059_v61, 0.0  ;;  %v2546_v34 = vpop.f32.mrb[8].mxu1  ;;  %vm1072_vm10 = vcmp.gt.f32.partialorder %v1059_v61, 0.0 }
 0x46b   : > { %2924 = vpow2.f32 %v1083_v58  ;;  %v1085_v3 = vmul.f32 1.442695, %v1078_v43  ;;  %v1256_v7 = vmin.f32 %v2546_v34, 0.0  ;;  %v1235_v4 = vpop.f32.mrb[9].mxu1  ;;  %vm1252_vm11 = vcmp.gt.f32.partialorder %v2546_v34, 0.0 }
 0x46c   : > { %2926 = vpow2.f32 %v1079_v63  ;;  %v1081_v10 = vmul.f32 1.442695, %v1076_v41  ;;  %v1254_v12 = vmin.f32 %v1235_v4, 0.0  ;;  %v2547_v13 = vpop.f32.mrb[10].mxu1  ;;  %vm1250_vm13 = vcmp.gt.f32.partialorder %v1235_v4, 0.0 }
 0x46d   : > { %2928 = vpow2.f32 %v1085_v3  ;;  %v1262_v33 = vmul.f32 1.442695, %v1256_v7  ;;  %v1257_v16 = vmin.f32 %v2547_v13, 0.0  ;;  %v1238_v18 = vpop.f32.mrb[11].mxu1  ;;  %vm1253_vm12 = vcmp.gt.f32.partialorder %v2547_v13, 0.0 }
 0x46e   : > { %2930 = vpow2.f32 %v1081_v10  ;;  %v1258_v25 = vmul.f32 1.442695, %v1254_v12  ;;  %v1255_v6 = vmin.f32 %v1238_v18, 0.0  ;;  %vm1251_vm14 = vcmp.gt.f32.partialorder %v1238_v18, 0.0 }
 0x46f   : > { %2932 = vpow2.f32 %v1262_v33  ;;  %v1264_v27 = vmul.f32 1.442695, %v1257_v16 }
 0x470   : > { %2934 = vpow2.f32 %v1258_v25  ;;  %v1260_v32 = vmul.f32 1.442695, %v1255_v6 }
 0x471   : > { %2936 = vpow2.f32 %v1264_v27 }
 0x472   : > { %2938 = vpow2.f32 %v1260_v32 }
 0x475   : > { %v2925_v59 = vpop.eup %2924 }
 0x476   : > { %v2927_v19 = vpop.eup %2926  ;;  %v2283_v22 = vadd.f32 -1.0, %v2925_v59 }
 0x477   : > { %v2929_v2 = vpop.eup %2928  ;;  %v2281_v21 = vadd.f32 -1.0, %v2927_v19 }
 0x478   : > { %v2931_v55 = vpop.eup %2930  ;;  %v2284_v62 = vadd.f32 -1.0, %v2929_v2  ;;  %v1093_v9 = vsel %vm1073_vm7, %v2530_v45, %v2283_v22 }
 0x479   : > { %v2933_v44 = vpop.eup %2932  ;;  %v2282_v15 = vadd.f32 -1.0, %v2931_v55  ;;  %v1091_v42 = vsel %vm1071_vm8, %v1056_v47, %v2281_v21 }
 0x47a   : > { %v2935_v35 = vpop.eup %2934  ;;  %v1094_v1 = vsel %vm1074_vm9, %v2531_v31, %v2284_v62  ;;  %v2289_v8 = vadd.f32 -1.0, %v2933_v44 }
 0x47b   : > { %v2937_v50 = vpop.eup %2936  ;;  %v2711_v56 = vpack.i.bf16 %v1094_v1, %v1093_v9  ;;  %v1092_v52 = vsel %vm1072_vm10, %v1059_v61, %v2282_v15  ;;  %v2287_v38 = vadd.f32 -1.0, %v2935_v35 }
 0x47c   : > { %v2939_v14 = vpop.eup %2938  ;;  %v2721_v51 = vpack.i.bf16 %v1092_v52, %v1091_v42  ;;  %v2290_v54 = vadd.f32 -1.0, %v2937_v50  ;;  %v1272_v40 = vsel %vm1252_vm11, %v2546_v34, %v2289_v8 }
 0x47d   : > { %v2288_v0 = vadd.f32 -1.0, %v2939_v14  ;;  %2712 = vrot.lane.b32.xlu0 %v2711_v56, %s3053_s15  ;;  %v1270_v37 = vsel %vm1250_vm13, %v1235_v4, %v2287_v38 }
 0x47e   : > { %v1273_v48 = vsel %vm1253_vm12, %v2547_v13, %v2290_v54  ;;  %v2562_v17 = vpop.f32.mrb[24].mxu0  ;;  %2722 = vrot.lane.b32.xlu1 %v2721_v51, %s3053_s15  ;;  %s3061_s15 = smov [#allocation2]  }
 0x47f   : > { %v2716_v57 = vpack.i.bf16 %v1273_v48, %v1272_v40  ;;  %v1271_v46 = vsel %vm1251_vm14, %v1238_v18, %v2288_v0  ;;  %v1435_v23 = vmin.f32 %v2562_v17, 0.0  ;;  %v1414_v29 = vpop.f32.mrb[25].mxu0  ;;  %vm1431_vm15 = vcmp.gt.f32.partialorder %v2562_v17, 0.0  ;;  %s2984_s16 = sshll.u32 %s3061_s15, 4  ;;  %s2985_s16 = int_to_ptr.vmem [resolvable:$false] %s2984_s16 }
 0x480   : > { %v2726_v36 = vpack.i.bf16 %v1271_v46, %v1270_v37  ;;  %v1433_v30 = vmin.f32 %v1414_v29, 0.0  ;;  %v2563_v53 = vpop.f32.mrb[26].mxu0  ;;  %vm1429_vm1 = vcmp.gt.f32.partialorder %v1414_v29, 0.0  ;;  %s2986_s17 = scalar_lea.vmem %s2985_s16, 512 }
 0x481   : > { %v1441_v60 = vmul.f32 1.442695, %v1435_v23  ;;  %v1436_v11 = vmin.f32 %v2563_v53, 0.0  ;;  %v1417_v5 = vpop.f32.mrb[27].mxu0  ;;  %2717 = vrot.lane.b32.xlu0 %v2716_v57, %s3049_s11  ;;  %vm1432_vm3 = vcmp.gt.f32.partialorder %v2563_v53, 0.0 }
 0x482   : > { %v1437_v45 = vmul.f32 1.442695, %v1433_v30  ;;  %v1434_v39 = vmin.f32 %v1417_v5, 0.0  ;;  %v2578_v47 = vpop.f32.mrb[12].mxu1  ;;  %2727 = vrot.lane.b32.xlu1 %v2726_v36, %s3049_s11  ;;  %vm1430_vm4 = vcmp.gt.f32.partialorder %v1417_v5, 0.0 }
 0x483   : > { %2940 = vpow2.f32 %v1441_v60  ;;  %v1443_v24 = vmul.f32 1.442695, %v1436_v11  ;;  %v1614_v31 = vmin.f32 %v2578_v47, 0.0  ;;  %v1593_v58 = vpop.f32.mrb[13].mxu1  ;;  %vm1610_vm5 = vcmp.gt.f32.partialorder %v2578_v47, 0.0 }
 0x484   : > { %2942 = vpow2.f32 %v1437_v45  ;;  %v1439_v43 = vmul.f32 1.442695, %v1434_v39  ;;  %v1612_v61 = vmin.f32 %v1593_v58, 0.0  ;;  %v2579_v63 = vpop.f32.mrb[14].mxu1  ;;  %vm1608_vm7 = vcmp.gt.f32.partialorder %v1593_v58, 0.0 }
 0x485   : > { %2944 = vpow2.f32 %v1443_v24  ;;  %v1620_v41 = vmul.f32 1.442695, %v1614_v31  ;;  %v1615_v34 = vmin.f32 %v2579_v63, 0.0  ;;  %v1596_v3 = vpop.f32.mrb[15].mxu1  ;;  %vm1611_vm6 = vcmp.gt.f32.partialorder %v2579_v63, 0.0 }
 0x486   : > { %2946 = vpow2.f32 %v1439_v43  ;;  %v1616_v7 = vmul.f32 1.442695, %v1612_v61  ;;  %v1613_v4 = vmin.f32 %v1596_v3, 0.0  ;;  %vm1609_vm8 = vcmp.gt.f32.partialorder %v1596_v3, 0.0 }
 0x487   : > { %2948 = vpow2.f32 %v1620_v41  ;;  %v1622_v10 = vmul.f32 1.442695, %v1615_v34 }
 0x488   : > { %2950 = vpow2.f32 %v1616_v7  ;;  %v1618_v12 = vmul.f32 1.442695, %v1613_v4 }
 0x489   : > { %2952 = vpow2.f32 %v1622_v10 }
 0x48a   : > { %2954 = vpow2.f32 %v1618_v12 }
 0x48d   : > { %v2941_v13 = vpop.eup %2940 }
 0x48e   : > { %v2943_v33 = vpop.eup %2942  ;;  %v2295_v16 = vadd.f32 -1.0, %v2941_v13 }
 0x48f   : > { %v2945_v18 = vpop.eup %2944  ;;  %v2293_v25 = vadd.f32 -1.0, %v2943_v33 }
 0x490   : > { %v2947_v6 = vpop.eup %2946  ;;  %v2296_v27 = vadd.f32 -1.0, %v2945_v18  ;;  %v1451_v22 = vsel %vm1431_vm15, %v2562_v17, %v2295_v16 }
 0x491   : > { %v2949_v32 = vpop.eup %2948  ;;  %v2294_v59 = vadd.f32 -1.0, %v2947_v6  ;;  %v1449_v62 = vsel %vm1429_vm1, %v1414_v29, %v2293_v25 }
 0x492   : > { %v2951_v19 = vpop.eup %2950  ;;  %v1452_v2 = vsel %vm1432_vm3, %v2563_v53, %v2296_v27  ;;  %v2301_v21 = vadd.f32 -1.0, %v2949_v32  ;;  %vm709_vm3 = vcmp.gt.f32.partialorder %v3992_v49, 0.0 }
 0x493   : > { %v2953_v55 = vpop.eup %2952  ;;  %v2731_v44 = vpack.i.bf16 %v1452_v2, %v1451_v22  ;;  %v1450_v15 = vsel %vm1430_vm4, %v1417_v5, %v2294_v59  ;;  %v2299_v35 = vadd.f32 -1.0, %v2951_v19  ;;  %vm707_vm4 = vcmp.gt.f32.partialorder %v3994_v28, 0.0 }
 0x494   : > { %v2955_v9 = vpop.eup %2954  ;;  %v2741_v1 = vpack.i.bf16 %v1450_v15, %v1449_v62  ;;  %v2302_v8 = vadd.f32 -1.0, %v2953_v55  ;;  %v1630_v42 = vsel %vm1610_vm5, %v2578_v47, %v2301_v21  ;;  %vm710_vm5 = vcmp.gt.f32.partialorder %v3996_v20, 0.0 }
 0x495   : > { %v2300_v50 = vadd.f32 -1.0, %v2955_v9  ;;  %2732 = vrot.lane.b32.xlu0 %v2731_v44, %s3047_s8  ;;  %v1628_v52 = vsel %vm1608_vm7, %v1593_v58, %v2299_v35  ;;  %vm2102_vm7 = vcmask 130048  }
 0x496   : > { %v1631_v56 = vsel %vm1611_vm6, %v2579_v63, %v2302_v8  ;;  %2742 = vrot.lane.b32.xlu1 %v2741_v1, %s3047_s8  ;;  %v713_v8 = vmin.f32 %v3992_v49, 0.0  ;;  %vm708_vm6 = vcmp.gt.f32.partialorder %v3998_v26, 0.0 }
 0x497   : > { %v2736_v38 = vpack.i.bf16 %v1631_v56, %v1630_v42  ;;  %v1629_v14 = vsel %vm1609_vm8, %v1596_v3, %v2300_v50  ;;  %v711_v50 = vmin.f32 %v3994_v28, 0.0  ;;  %v714_v42 = vmin.f32 %v3996_v20, 0.0 }
 0x498   : > { %v2746_v51 = vpack.i.bf16 %v1629_v14, %v1628_v52  ;;  %v712_v56 = vmin.f32 %v3998_v26, 0.0  ;;  %v719_v52 = vmul.f32 1.442695, %v713_v8  ;;  %vm2107_vm8 = vcmask 261120  }
 0x499   : > { %2737 = vrot.lane.b32.xlu0 %v2736_v38, %s3052_s14  ;;  %v715_v38 = vmul.f32 1.442695, %v711_v50  ;;  %v721_v14 = vmul.f32 1.442695, %v714_v42 }
 0x49a   : > { %2747 = vrot.lane.b32.xlu1 %v2746_v51, %s3052_s14  ;;  %v717_v51 = vmul.f32 1.442695, %v712_v56 }
 0x4a3   : > { %v2594_v54 = vpop.f32.mrb[28].mxu0 }
 0x4a4   : > { %v1793_v0 = vmin.f32 %v2594_v54, 0.0  ;;  %v1772_v40 = vpop.f32.mrb[29].mxu0  ;;  %vm1789_vm9 = vcmp.gt.f32.partialorder %v2594_v54, 0.0 }
 0x4a5   : > { %v1791_v48 = vmin.f32 %v1772_v40, 0.0  ;;  %v2595_v17 = vpop.f32.mrb[30].mxu0  ;;  %vm1787_vm10 = vcmp.gt.f32.partialorder %v1772_v40, 0.0 }
 0x4a6   : > { %v1799_v37 = vmul.f32 1.442695, %v1793_v0  ;;  %v1794_v57 = vmin.f32 %v2595_v17, 0.0  ;;  %v1775_v46 = vpop.f32.mrb[31].mxu0  ;;  %vm1790_vm11 = vcmp.gt.f32.partialorder %v2595_v17, 0.0 }
 0x4a7   : > { %v1795_v23 = vmul.f32 1.442695, %v1791_v48  ;;  %v1792_v29 = vmin.f32 %v1775_v46, 0.0  ;;  %v2610_v36 = vpop.f32.mrb[16].mxu1  ;;  %vm1788_vm12 = vcmp.gt.f32.partialorder %v1775_v46, 0.0 }
 0x4a8   : > { %2956 = vpow2.f32 %v1799_v37  ;;  %v1801_v30 = vmul.f32 1.442695, %v1794_v57  ;;  %v1972_v53 = vmin.f32 %v2610_v36, 0.0  ;;  %v1951_v60 = vpop.f32.mrb[17].mxu1  ;;  %vm1968_vm13 = vcmp.gt.f32.partialorder %v2610_v36, 0.0 }
 0x4a9   : > { %2958 = vpow2.f32 %v1795_v23  ;;  %v1797_v11 = vmul.f32 1.442695, %v1792_v29  ;;  %v1970_v5 = vmin.f32 %v1951_v60, 0.0  ;;  %v2611_v45 = vpop.f32.mrb[18].mxu1  ;;  %vm1966_vm15 = vcmp.gt.f32.partialorder %v1951_v60, 0.0 }
 0x4aa   : > { %2960 = vpow2.f32 %v1801_v30  ;;  %v1978_v39 = vmul.f32 1.442695, %v1972_v53  ;;  %v1973_v47 = vmin.f32 %v2611_v45, 0.0  ;;  %v1954_v24 = vpop.f32.mrb[19].mxu1  ;;  %vm1969_vm14 = vcmp.gt.f32.partialorder %v2611_v45, 0.0 }
 0x4ab   : > { %2962 = vpow2.f32 %v1797_v11  ;;  %v1974_v31 = vmul.f32 1.442695, %v1970_v5  ;;  %v1971_v58 = vmin.f32 %v1954_v24, 0.0  ;;  %vm1967_vm1 = vcmp.gt.f32.partialorder %v1954_v24, 0.0 }
 0x4ac   : > { %2964 = vpow2.f32 %v1978_v39  ;;  %v1980_v43 = vmul.f32 1.442695, %v1973_v47 }
 0x4ad   : > { %2966 = vpow2.f32 %v1974_v31  ;;  %v1976_v61 = vmul.f32 1.442695, %v1971_v58 }
 0x4ae   : > { %2968 = vpow2.f32 %v1980_v43 }
 0x4af   : > { %2970 = vpow2.f32 %v1976_v61 }
 0x4b0   : > { %2972 = vpow2.f32 %v719_v52 }
 0x4b1   : > { %2974 = vpow2.f32 %v715_v38 }
 0x4b2   : > { %v2957_v63 = vpop.eup %2956  ;;  %2976 = vpow2.f32 %v721_v14 }
 0x4b3   : > { %v2959_v41 = vpop.eup %2958  ;;  %v2307_v34 = vadd.f32 -1.0, %v2957_v63  ;;  %2978 = vpow2.f32 %v717_v51 }
 0x4b4   : > { %v2961_v3 = vpop.eup %2960  ;;  %v2305_v7 = vadd.f32 -1.0, %v2959_v41 }
 0x4b5   : > { %v2963_v4 = vpop.eup %2962  ;;  %v2308_v10 = vadd.f32 -1.0, %v2961_v3  ;;  %v1809_v16 = vsel %vm1789_vm9, %v2594_v54, %v2307_v34  ;;  %vm2112_vm9 = vcmask 392192  }
 0x4b6   : > { %v2965_v12 = vpop.eup %2964  ;;  %v2306_v13 = vadd.f32 -1.0, %v2963_v4  ;;  %v1807_v27 = vsel %vm1787_vm10, %v1772_v40, %v2305_v7  ;;  %vm2121_vm10 = vcmask 654336  }
 0x4b7   : > { %v2967_v33 = vpop.eup %2966  ;;  %v1810_v18 = vsel %vm1790_vm11, %v2595_v17, %v2308_v10  ;;  %v2313_v25 = vadd.f32 -1.0, %v2965_v12  ;;  %vm2130_vm11 = vcmask 916480  }
 0x4b8   : > { %v2969_v6 = vpop.eup %2968  ;;  %v2751_v32 = vpack.i.bf16 %v1810_v18, %v1809_v16  ;;  %v1808_v59 = vsel %vm1788_vm12, %v1775_v46, %v2306_v13  ;;  %v2311_v19 = vadd.f32 -1.0, %v2967_v33 }
 0x4b9   : > { %v2971_v22 = vpop.eup %2970  ;;  %v2756_v2 = vpack.i.bf16 %v1808_v59, %v1807_v27  ;;  %v2314_v21 = vadd.f32 -1.0, %v2969_v6  ;;  %v1988_v62 = vsel %vm1968_vm13, %v2610_v36, %v2313_v25 }
 0x4ba   : > { %v2312_v55 = vadd.f32 -1.0, %v2971_v22  ;;  %2752 = vrot.lane.b32.xlu0 %v2751_v32, %s3050_s12  ;;  %v1986_v15 = vsel %vm1966_vm15, %v1951_v60, %v2311_v19  ;;  %v2973_v17 = vpop.eup %2972 }
 0x4bb   : > { %v1989_v44 = vsel %vm1969_vm14, %v2611_v45, %v2314_v21  ;;  %2757 = vrot.lane.b32.xlu1 %v2756_v2, %s3050_s12  ;;  %v2975_v37 = vpop.eup %2974  ;;  %v2271_v36 = vadd.f32 -1.0, %v2973_v17  ;;  %s4061_s12 = scalar_lea.hbm %s4115_s5, %s2328_s7 }
 0x4bc   : > { %v2766_v35 = vpack.i.bf16 %v1989_v44, %v1988_v62  ;;  %v1987_v9 = vsel %vm1967_vm1, %v1954_v24, %v2312_v55  ;;  %v2977_v46 = vpop.eup %2976  ;;  %v2269_v30 = vadd.f32 -1.0, %v2975_v37 }
 0x4bd   : > { %v2761_v1 = vpack.i.bf16 %v1987_v9, %v1986_v15  ;;  %v2979_v29 = vpop.eup %2978  ;;  %v2272_v53 = vadd.f32 -1.0, %v2977_v46  ;;  %v729_v47 = vsel %vm709_vm3, %v3992_v49, %v2271_v36 }
 0x4be   : > { %2767 = vrot.lane.b32.xlu0 %v2766_v35, %s3048_s10  ;;  %v2703_v54 = vpop.permute.xlu0 %2702  ;;  %v2270_v11 = vadd.f32 -1.0, %v2979_v29  ;;  %v727_v58 = vsel %vm707_vm4, %v3994_v28, %v2269_v30 }
 0x4bf   : > { %2762 = vrot.lane.b32.xlu1 %v2761_v1, %s3048_s10  ;;  %v2708_v0 = vpop.permute.xlu1 %2707  ;;  %v2705_v45 = vunpack.i.h.bf16 %v2703_v54  ;;  %v2704_v39 = vunpack.i.l.bf16 %v2703_v54  ;;  %v730_v43 = vsel %vm710_vm5, %v3996_v20, %v2272_v53  ;;  %s2169_s10 = sshll.u32 %s218_s9, 4  ;;  %s4063_s10 = int_to_ptr.vmem [resolvable:$true] %s2169_s10 }
 0x4c0   : > { %v2710_v24 = vunpack.i.h.bf16 %v2708_v0  ;;  %v2709_v31 = vunpack.i.l.bf16 %v2708_v0  ;;  %v728_v41 = vsel %vm708_vm6, %v3998_v26, %v2270_v11  ;;  %s2980_s14 = scalar_lea.vmem %s4063_s10, 256  ;;  %p2987_p0 = scmp.lt.s32.totalorder %s4063_s10, %s2985_s16 }
 0x4c1   : > { %v2106_v7 = vsel %vm2102_vm7, %v730_v43, %v2705_v45  ;;  %v2105_v4 = vsel %vm2102_vm7, %v729_v47, %v2704_v39  ;;  %p2981_p11 = scmp.ne.s32.totalorder %s4063_s10, %s2980_s14  ;;  %p2988_p1 = scmp.lt.s32.totalorder %s2986_s17, %s2980_s14 }
 0x4c2   : > { %v2104_v10 = vsel %vm2102_vm7, %v728_v41, %v2710_v24  ;;  %v2103_v28 = vsel %vm2102_vm7, %v727_v58, %v2709_v31 }
 0x4c3   : > { %p2982_p12 = pnand %p2981_p11, %p3131_p5  ;;  %p2989_p2 = por %p2988_p1, %p2987_p0 }
 0x4c5   : > { %p2983_p13 = pneg %p2982_p12 }
 0x4c7   : > { %p2990_p3 = pnand %p2989_p2, %p2983_p13 }
 0x4ef   : > { %v2713_v40 = vpop.permute.xlu0 %2712 }
 0x4f0   : > { %v2723_v48 = vpop.permute.xlu1 %2722  ;;  %v2715_v61 = vunpack.i.h.bf16 %v2713_v40  ;;  %v2714_v63 = vunpack.i.l.bf16 %v2713_v40 }
 0x4f1   : > { %v2725_v34 = vunpack.i.h.bf16 %v2723_v48  ;;  %v2724_v3 = vunpack.i.l.bf16 %v2723_v48 }
 0x4f2   : > { %v2111_v26 = vsel %vm2107_vm8, %v2106_v7, %v2715_v61  ;;  %v2110_v33 = vsel %vm2107_vm8, %v2105_v4, %v2714_v63 }
 0x4f3   : > { %v2718_v57 = vpop.permute.xlu0 %2717  ;;  %v2108_v25 = vsel %vm2107_vm8, %v2103_v28, %v2724_v3  ;;  %v2109_v6 = vsel %vm2107_vm8, %v2104_v10, %v2725_v34 }
 0x4f4   : > { %v2728_v23 = vpop.permute.xlu1 %2727  ;;  %v2720_v20 = vunpack.i.h.bf16 %v2718_v57  ;;  %v2719_v12 = vunpack.i.l.bf16 %v2718_v57 }
 0x4f5   : > { %v2730_v16 = vunpack.i.h.bf16 %v2728_v23  ;;  %v2729_v18 = vunpack.i.l.bf16 %v2728_v23 }
 0x4f6   : > { %v2115_v55 = vsel %vm2112_vm9, %v2110_v33, %v2719_v12  ;;  %v2116_v62 = vsel %vm2112_vm9, %v2111_v26, %v2720_v20 }
 0x4f7   : > { %v2113_v9 = vsel %vm2112_vm9, %v2108_v25, %v2729_v18  ;;  %v2114_v1 = vsel %vm2112_vm9, %v2109_v6, %v2730_v16 }
 0x507   : > { %v2733_v60 = vpop.permute.xlu0 %2732 }
 0x508   : > { %v2743_v5 = vpop.permute.xlu1 %2742  ;;  %v2735_v27 = vunpack.i.h.bf16 %v2733_v60  ;;  %v2734_v32 = vunpack.i.l.bf16 %v2733_v60 }
 0x509   : > { %v2745_v59 = vunpack.i.h.bf16 %v2743_v5  ;;  %v2744_v19 = vunpack.i.l.bf16 %v2743_v5 }
 0x50a   : > { %v2120_v42 = vsel %vm301_vm0, %v2116_v62, %v2735_v27  ;;  %v2119_v56 = vsel %vm301_vm0, %v2115_v55, %v2734_v32 }
 0x50b   : > { %v2738_v49 = vpop.permute.xlu0 %2737  ;;  %v2117_v14 = vsel %vm301_vm0, %v2113_v9, %v2744_v19  ;;  %v2118_v51 = vsel %vm301_vm0, %v2114_v1, %v2745_v59 }
 0x50c   : > { %v2748_v13 = vpop.permute.xlu1 %2747  ;;  %v2740_v22 = vunpack.i.h.bf16 %v2738_v49  ;;  %v2739_v2 = vunpack.i.l.bf16 %v2738_v49 }
 0x50d   : > { %v2750_v44 = vunpack.i.h.bf16 %v2748_v13  ;;  %v2749_v15 = vunpack.i.l.bf16 %v2748_v13 }
 0x50e   : > { %v2125_v54 = vsel %vm2121_vm10, %v2120_v42, %v2740_v22  ;;  %v2124_v0 = vsel %vm2121_vm10, %v2119_v56, %v2739_v2 }
 0x50f   : > { %v2122_v48 = vsel %vm2121_vm10, %v2117_v14, %v2749_v15  ;;  %v2123_v17 = vsel %vm2121_vm10, %v2118_v51, %v2750_v44 }
 0x52c   : > { %v2753_v21 = vpop.permute.xlu0 %2752 }
 0x52d   : > { %v2758_v35 = vpop.permute.xlu1 %2757  ;;  %v2755_v8 = vunpack.i.h.bf16 %v2753_v21  ;;  %v2754_v50 = vunpack.i.l.bf16 %v2753_v21 }
 0x52e   : > { %v2760_v52 = vunpack.i.h.bf16 %v2758_v35  ;;  %v2759_v38 = vunpack.i.l.bf16 %v2758_v35 }
 0x52f   : > { %v2129_v23 = vsel %vm605_vm2, %v2125_v54, %v2755_v8  ;;  %v2128_v29 = vsel %vm605_vm2, %v2124_v0, %v2754_v50 }
 0x530   : > { %v2768_v40 = vpop.permute.xlu0 %2767  ;;  %v2126_v53 = vsel %vm605_vm2, %v2122_v48, %v2759_v38  ;;  %v2127_v60 = vsel %vm605_vm2, %v2123_v17, %v2760_v52 }
 0x531   : > { %v2770_v37 = vunpack.i.h.bf16 %v2768_v40  ;;  %v2769_v57 = vunpack.i.l.bf16 %v2768_v40  ;;  %v2763_v46 = vpop.permute.xlu1 %2762 }
 0x532   : > { %v2765_v36 = vunpack.i.h.bf16 %v2763_v46  ;;  %v2764_v30 = vunpack.i.l.bf16 %v2763_v46 }
 0x533   : > { %v2133_v11 = vsel %vm2130_vm11, %v2128_v29, %v2769_v57  ;;  %v2134_v5 = vsel %vm2130_vm11, %v2129_v23, %v2770_v37 }
 0x534   : > { %v2345_v45 = vpack.c.bf16 %v2134_v5, %v2133_v11  ;;  %v2131_v39 = vsel %vm2130_vm11, %v2126_v53, %v2764_v30  ;;  %v2132_v47 = vsel %vm2130_vm11, %v2127_v60, %v2765_v36 }
 0x535   : > { %v2340_v24 = vpack.c.bf16 %v2132_v47, %v2131_v39 }
 0x536   : > { %2348 = vst [vmem:[%s218_s9 + $0x8] sm:$0xff] %v2345_v45  }
 0x537   : > { %2341 = vst [vmem:[%s218_s9] sm:$0xff] %v2340_v24  }
 0x538   : > { %2993 = shalt.err (!%p2990_p3)
}
 0x539   : > { %s2994_s23 = scalar_lea.hbm %s4061_s12, 256  ;;  %s2998_s30 = scalar_lea.hbm %s4115_s5, 768 }
 0x53a   : > { %p2995_p4 = scmp.ne.s32.totalorder %s4061_s12, %s2994_s23  ;;  %p2999_p9 = scmp.lt.u32.totalorder %s4061_s12, %s4115_s5 }
 0x53b   : > { %p3000_p10 = scmp.lt.u32.totalorder %s2998_s30, %s2994_s23  ;;  %p3002_p12 = scmp.lt.u32.totalorder %s2994_s23, %s4061_s12 }
 0x53c   : > { %p2996_p7 = pnand %p2995_p4, %p3131_p5 }
 0x53d   : > { %p3001_p11 = por %p3000_p10, %p2999_p9 }
 0x53e   : > { %p2997_p8 = pneg %p2996_p7 }
 0x53f   : > { %p3003_p13 = por %p3002_p12, %p3001_p11 }
 0x541   : > { %p3004_p0 = pnand %p3003_p13, %p2997_p8 }
 0x543   : > { %3007 = shalt.err (!%p3004_p0)
}
 0x544   : > { %s3062_s9 = smov 4  }
 0x545   : > { %2612 = dma.vmem_to_hbm [thread:$0]  (%p3131_p5), %s4063_s10, 256, %s4061_s12, %s4067_s13, %s3047_s8, %s3047_s8, %s3062_s9  }
 0x546 PF: > { %p2618_p1 = scmp.ge.s32.totalorder %s3042_s21, 2  ;;  %s2184_s22 = sand.u32 1, %s3030_s18  }
 0x547   : > { %s2185_s11 = scalar_lea.sflag [#allocation3], %s2184_s22 }
 0x548   : > { %p2615_p2 = pnand %p2618_p1, %p3135_p6 }
 0x54a   : > { %3025 = dma.done.wait (!%p2615_p2), %s2185_s11, 256  }
 0x54b   : > { %3027 = vsyncadd (!%p2615_p2), %s2185_s11, 4294967040  ;;  %p15_p3 = scmp.ge.s32.totalorder %s3118_s24, 5   ;;  %s4188_s18 = smov %s3034_s19 }
 0x54c   : > { %s4189_s19 = smov %s3038_s20  ;;  %s4190_s20 = smov %s3129_s27 }
 0x54d   : > { %s4191_s21 = smov %s3118_s24  ;;  %17 = sbr.rel (!%p15_p3) target bundleno = 3 (0x3), region = 76 }
 0x554   :  { %2190 = vsyncpa [#allocation3], 1 }
 0x555   :  { %2192 = vsyncpa [#allocation3 + $0x1], 1 }

</bundles_post_ra>
